<compile_context>
chip_gen: v7x
topology: tpu7x:2x2x1
jax: 0.10.0
libtpu: 0.0.40
codegen_flags: <defaults>
</compile_context>

<pallas_src>
import numpy as np
import jax
import jax.numpy as jnp
from jax.experimental import pallas as pl
from jax.experimental.pallas import tpu as pltpu

C_FEAT = 512   # backbone output channels (fc_dim = 512 in the module)


def _make_pool_matrix(H, W, g):
    """(g*H*W, g*(H//2)*(W//2)) block-diagonal 2x2/stride-2 average-pool matrix."""
    Hout, Wout = H // 2, W // 2
    P = np.zeros((H * W, Hout * Wout), np.float32)
    for i in range(Hout):
        for j in range(Wout):
            for di in (0, 1):
                for dj in (0, 1):
                    P[(2 * i + di) * W + (2 * j + dj), i * Wout + j] = 0.25
    if g > 1:
        P = np.kron(np.eye(g, dtype=np.float32), P)
    return jnp.asarray(P)


def _avgpool_kernel(x_ref, p_ref, o_ref):
    # x_ref: (tm, g*H*W) tile of flattened channel maps (row-major NCHW view)
    # p_ref: (g*H*W, g*Hout*Wout) constant pooling matrix, resident across the grid
    o_ref[...] = jnp.dot(x_ref[...], p_ref[...],
                         preferred_element_type=jnp.float32).astype(o_ref.dtype)


def visualnet_dilated_pallas(feat, *, tm=512):
    """VisualNetDilated.forward given the backbone feature map.

    feat: (N, 512, H, W) float32 with even H, W.
    returns F.avg_pool2d(feat, kernel_size=2, stride=2): (N, 512, H//2, W//2).
    """
    N, C, H, W = feat.shape
    assert C == C_FEAT
    assert H % 2 == 0 and W % 2 == 0, "avg_pool2d(2,2) expects even spatial dims"
    Hout, Wout = H // 2, W // 2
    NC = N * C

    # Pack `g` whole channel maps per kernel row so the output tile is
    # lane-dense (>=128 lanes) while keeping the pooling matrix small.
    g = 1
    while (g * Hout * Wout < 128
           and NC % (2 * g) == 0
           and (2 * g * H * W) * (2 * g * Hout * Wout) * 4 <= (2 << 20)):
        g *= 2

    K = g * H * W            # input tile lane width
    Co = g * Hout * Wout     # output tile lane width
    rows = NC // g

    P = _make_pool_matrix(H, W, g)

    # Row-major views only — no transposes, no extra HBM traffic.
    x2 = feat.reshape(rows, K)

    tm_eff = rows if rows <= tm else tm
    n_blocks = pl.cdiv(rows, tm_eff)
    rows_pad = n_blocks * tm_eff
    if rows_pad != rows:
        x2 = jnp.pad(x2, ((0, rows_pad - rows), (0, 0)))

    cost = pl.CostEstimate(
        flops=2 * rows_pad * K * Co,
        transcendentals=0,
        bytes_accessed=4 * (rows_pad * K + rows_pad * Co + K * Co),
    )

    out = pl.pallas_call(
        _avgpool_kernel,
        out_shape=jax.ShapeDtypeStruct((rows_pad, Co), feat.dtype),
        grid_spec=pltpu.PrefetchScalarGridSpec(
            num_scalar_prefetch=0,
            grid=(n_blocks,),
            in_specs=[pl.BlockSpec((tm_eff, K), lambda i: (i, 0)),
                      pl.BlockSpec((K, Co), lambda i: (0, 0))],
            out_specs=pl.BlockSpec((tm_eff, Co), lambda i: (i, 0)),
        ),
        compiler_params=pltpu.CompilerParams(
            dimension_semantics=("parallel",)),
        cost_estimate=cost,
    )(x2, P)

    out = out[:rows]
    return out.reshape(N, C, Hout, Wout)


def avgpool_reference(feat):
    """Pure-JAX reference for F.avg_pool2d(feat, 2, 2)."""
    N, C, H, W = feat.shape
    return feat.reshape(N, C, H // 2, 2, W // 2, 2).mean(axis=(3, 5))


if __name__ == "__main__":
    key = jax.random.PRNGKey(0)
    # Backbone (self.features) output at dilate_scale=16: (N=2, C=512, H=16, W=16)
    feat = jax.random.normal(key, (2, C_FEAT, 16, 16), jnp.float32)

    fwd = jax.jit(visualnet_dilated_pallas)
    out = jax.block_until_ready(fwd(feat))

    ref = avgpool_reference(feat)
    assert out.shape == (2, C_FEAT, 8, 8)
    assert jnp.allclose(out, ref, atol=1e-4, rtol=1e-4), "mismatch vs reference"

    print("KERNEL_OK")
</pallas_src>

<mosaic_0001>
module attributes {stable_mosaic.version = 11 : i64} {
  func.func @_avgpool_kernel(%arg0: i32, %arg1: memref<512x512xf32, #tpu.memory_space<vmem>>, %arg2: memref<512x128xf32, #tpu.memory_space<vmem>>, %arg3: memref<512x128xf32, #tpu.memory_space<vmem>>) attributes {dimension_semantics = [#tpu.dimension_semantics<parallel>], iteration_bounds = array<i64: 1>, scalar_prefetch = 0 : i64, scratch_operands = 0 : i64, tpu.core_type = #tpu.core_type<tc>, window_params = [{transform_indices = @transform_0, window_bounds = array<i64: 512, 512>}, {pipeline_mode = #tpu.pipeline_mode<synchronous>, transform_indices = @transform_1, window_bounds = array<i64: 512, 128>}, {transform_indices = @transform_2, window_bounds = array<i64: 512, 128>}]} {
    %c0 = arith.constant 0 : index
    %c0_0 = arith.constant 0 : index
    %0 = vector.load %arg1[%c0, %c0_0] : memref<512x512xf32, #tpu.memory_space<vmem>>, vector<512x512xf32>
    %c0_1 = arith.constant 0 : index
    %c0_2 = arith.constant 0 : index
    %1 = vector.load %arg2[%c0_1, %c0_2] : memref<512x128xf32, #tpu.memory_space<vmem>>, vector<512x128xf32>
    %cst = arith.constant dense<0.000000e+00> : vector<512x128xf32>
    %2 = tpu.matmul %0, %1, %cst {dimension_numbers = #tpu.dot_dimension_numbers<[1], [0], [0], [1], [0, 0, 1, 1], [], []>} : vector<512x512xf32>, vector<512x128xf32>, vector<512x128xf32> -> vector<512x128xf32>
    %c0_3 = arith.constant 0 : index
    %c0_4 = arith.constant 0 : index
    %3 = vector.load %arg3[%c0_3, %c0_4] : memref<512x128xf32, #tpu.memory_space<vmem>>, vector<512x128xf32>
    tpu.vector_store %arg3[%c0_3, %c0_4], %2 {strides = array<i32>} : memref<512x128xf32, #tpu.memory_space<vmem>>, vector<512x128xf32>,
    return
  }
  func.func @transform_0(%arg0: i32) -> (i32, i32) {
    %c0_i32 = arith.constant 0 : i32
    %c0_i32_0 = arith.constant 0 : i32
    return %arg0, %c0_i32 : i32, i32
  }
  func.func @transform_1(%arg0: i32) -> (i32, i32) {
    %c0_i32 = arith.constant 0 : i32
    %c0_i32_0 = arith.constant 0 : i32
    %c0_i32_1 = arith.constant 0 : i32
    return %c0_i32, %c0_i32_0 : i32, i32
  }
  func.func @transform_2(%arg0: i32) -> (i32, i32) {
    %c0_i32 = arith.constant 0 : i32
    %c0_i32_0 = arith.constant 0 : i32
    return %arg0, %c0_i32 : i32, i32
  }
}

</mosaic_0001>

<bundles_post_ra>
// kernel: visualnet_dilated_pallas.1
= control target key start
LH: loop header
LB: loop body
LE: loop exit
PB: predicated region body
PF: predicated region fallthrough
CT: control target
= control target key end

     0   :  { %v1330_v0 = vmov 0.0|0.0   ;;  %s2530_s1 = inlined_call_operand.vmem [shape: f32[512,128], index: 1, kind: input, shape index: {}]   ;;  %s2531_s0 = inlined_call_operand.vmem [shape: f32[512,512], index: 0, kind: input, shape index: {}]   ;;  %s2532_s2 = inlined_call_operand.vmem [shape: f32[512,128], index: 2, kind: output, shape index: {}]  }
   0x1   :  { %1169 = vmatprep.subr.bf16.mxu1 %v1330_v0  ;;  %1217 = vmatprep.subr.bf16.mxu0 %v1330_v0  ;;  %v267_v1 = vld [vmem:[%s2530_s1] sm:$0xff]  ;;  %v268_v2 = vld [vmem:[%s2530_s1 + $0x8] sm:$0xff]  ;;  %v269_v6 = vld [vmem:[%s2530_s1 + $0x10] sm:$0xff] }
   0x2   :  { %v299_v3 = vld [vmem:[%s2530_s1 + $0x100] sm:$0xff]  ;;  %v1170_v4 = vpack.c.bf16 %v268_v2, %v267_v1  ;;  %v300_v5 = vld [vmem:[%s2530_s1 + $0x108] sm:$0xff]  ;;  %v270_v7 = vld [vmem:[%s2530_s1 + $0x18] sm:$0xff] }
   0x3   :  { %v1218_v8 = vpack.c.bf16 %v300_v5, %v299_v3  ;;  %v301_v9 = vld [vmem:[%s2530_s1 + $0x110] sm:$0xff]  ;;  %v302_v10 = vld [vmem:[%s2530_s1 + $0x118] sm:$0xff]  ;;  %v1173_v11 = vpack.c.bf16 %v270_v7, %v269_v6  ;;  %v271_v13 = vld [vmem:[%s2530_s1 + $0x20] sm:$0xff] }
   0x4   :  { %1171 = vmatpush1.bf16.msra.mxu1 %v1170_v4  ;;  %v1221_v12 = vpack.c.bf16 %v302_v10, %v301_v9  ;;  %v272_v14 = vld [vmem:[%s2530_s1 + $0x28] sm:$0xff]  ;;  %v303_v15 = vld [vmem:[%s2530_s1 + $0x120] sm:$0xff]  ;;  %v273_v19 = vld [vmem:[%s2530_s1 + $0x30] sm:$0xff] }
   0x5   :  { %1219 = vmatpush1.bf16.msra.mxu0 %v1218_v8  ;;  %1172 = vmatprep.subr.bf16.mxu1 %v1330_v0  ;;  %v304_v16 = vld [vmem:[%s2530_s1 + $0x128] sm:$0xff]  ;;  %v1176_v17 = vpack.c.bf16 %v272_v14, %v271_v13  ;;  %v274_v20 = vld [vmem:[%s2530_s1 + $0x38] sm:$0xff]  ;;  %v305_v21 = vld [vmem:[%s2530_s1 + $0x130] sm:$0xff] }
   0x6   :  { %1220 = vmatprep.subr.bf16.mxu0 %v1330_v0  ;;  %v1224_v18 = vpack.c.bf16 %v304_v16, %v303_v15  ;;  %v306_v22 = vld [vmem:[%s2530_s1 + $0x138] sm:$0xff]  ;;  %v1179_v23 = vpack.c.bf16 %v274_v20, %v273_v19  ;;  %v275_v25 = vld [vmem:[%s2530_s1 + $0x40] sm:$0xff]  ;;  %v276_v26 = vld [vmem:[%s2530_s1 + $0x48] sm:$0xff] }
   0x7   :  { %v1227_v24 = vpack.c.bf16 %v306_v22, %v305_v21  ;;  %v307_v27 = vld [vmem:[%s2530_s1 + $0x140] sm:$0xff]  ;;  %v308_v28 = vld [vmem:[%s2530_s1 + $0x148] sm:$0xff]  ;;  %v1182_v29 = vpack.c.bf16 %v276_v26, %v275_v25  ;;  %v277_v31 = vld [vmem:[%s2530_s1 + $0x50] sm:$0xff] }
   0x8   :  { %1174 = vmatpush1.bf16.msra.mxu1 %v1173_v11  ;;  %v1230_v30 = vpack.c.bf16 %v308_v28, %v307_v27  ;;  %v278_v32 = vld [vmem:[%s2530_s1 + $0x58] sm:$0xff]  ;;  %v309_v33 = vld [vmem:[%s2530_s1 + $0x150] sm:$0xff]  ;;  %v279_v37 = vld [vmem:[%s2530_s1 + $0x60] sm:$0xff] }
   0x9   :  { %1222 = vmatpush1.bf16.msra.mxu0 %v1221_v12  ;;  %1175 = vmatprep.subr.bf16.mxu1 %v1330_v0  ;;  %v310_v34 = vld [vmem:[%s2530_s1 + $0x158] sm:$0xff]  ;;  %v1185_v35 = vpack.c.bf16 %v278_v32, %v277_v31  ;;  %v280_v38 = vld [vmem:[%s2530_s1 + $0x68] sm:$0xff]  ;;  %v311_v39 = vld [vmem:[%s2530_s1 + $0x160] sm:$0xff] }
   0xa   :  { %1223 = vmatprep.subr.bf16.mxu0 %v1330_v0  ;;  %v1233_v36 = vpack.c.bf16 %v310_v34, %v309_v33  ;;  %v312_v40 = vld [vmem:[%s2530_s1 + $0x168] sm:$0xff]  ;;  %v14_v42 = vld [vmem:[%s2531_s0 + $0x18] sm:$0xff]  ;;  %v1188_v43 = vpack.c.bf16 %v280_v38, %v279_v37  ;;  %v281_v45 = vld [vmem:[%s2530_s1 + $0x70] sm:$0xff] }
   0xb   :  { %v12_v41 = vld [vmem:[%s2531_s0 + $0x8] sm:$0xff]  ;;  %780 = vmatprep.mubr.f32.mxu0 %v14_v42  ;;  %v1236_v44 = vpack.c.bf16 %v312_v40, %v311_v39  ;;  %v282_v46 = vld [vmem:[%s2530_s1 + $0x78] sm:$0xff]  ;;  %v313_v47 = vld [vmem:[%s2530_s1 + $0x170] sm:$0xff] }
   0xc   :  { %1177 = vmatpush1.bf16.msra.mxu1 %v1176_v17  ;;  %395 = vmatprep.mubr.f32.mxu1 %v12_v41  ;;  %v314_v48 = vld [vmem:[%s2530_s1 + $0x178] sm:$0xff]  ;;  %v1191_v49 = vpack.c.bf16 %v282_v46, %v281_v45  ;;  %v283_v51 = vld [vmem:[%s2530_s1 + $0x80] sm:$0xff]  ;;  %v284_v52 = vld [vmem:[%s2530_s1 + $0x88] sm:$0xff] }
   0xd   :  { %1225 = vmatpush1.bf16.msra.mxu0 %v1224_v18  ;;  %1178 = vmatprep.subr.bf16.mxu1 %v1330_v0  ;;  %v1239_v50 = vpack.c.bf16 %v314_v48, %v313_v47  ;;  %v315_v53 = vld [vmem:[%s2530_s1 + $0x180] sm:$0xff]  ;;  %v316_v54 = vld [vmem:[%s2530_s1 + $0x188] sm:$0xff]  ;;  %v1194_v55 = vpack.c.bf16 %v284_v52, %v283_v51  ;;  %v285_v57 = vld [vmem:[%s2530_s1 + $0x90] sm:$0xff] }
   0xe   :  { %1226 = vmatprep.subr.bf16.mxu0 %v1330_v0  ;;  %v1242_v56 = vpack.c.bf16 %v316_v54, %v315_v53  ;;  %v286_v58 = vld [vmem:[%s2530_s1 + $0x98] sm:$0xff]  ;;  %v317_v59 = vld [vmem:[%s2530_s1 + $0x190] sm:$0xff]  ;;  %v287_v63 = vld [vmem:[%s2530_s1 + $0xa0] sm:$0xff] }
   0xf   :  { %v318_v60 = vld [vmem:[%s2530_s1 + $0x198] sm:$0xff]  ;;  %v1197_v61 = vpack.c.bf16 %v286_v58, %v285_v57  ;;  %v288_v1 = vld [vmem:[%s2530_s1 + $0xa8] sm:$0xff]  ;;  %v319_v2 = vld [vmem:[%s2530_s1 + $0x1a0] sm:$0xff] }
  0x10   :  { %1180 = vmatpush1.bf16.msra.mxu1 %v1179_v23  ;;  %v1245_v62 = vpack.c.bf16 %v318_v60, %v317_v59  ;;  %v320_v3 = vld [vmem:[%s2530_s1 + $0x1a8] sm:$0xff]  ;;  %v1200_v4 = vpack.c.bf16 %v288_v1, %v287_v63  ;;  %v289_v6 = vld [vmem:[%s2530_s1 + $0xb0] sm:$0xff]  ;;  %v290_v7 = vld [vmem:[%s2530_s1 + $0xb8] sm:$0xff] }
  0x11   :  { %1228 = vmatpush1.bf16.msra.mxu0 %v1227_v24  ;;  %1181 = vmatprep.subr.bf16.mxu1 %v1330_v0  ;;  %v1248_v5 = vpack.c.bf16 %v320_v3, %v319_v2  ;;  %v321_v8 = vld [vmem:[%s2530_s1 + $0x1b0] sm:$0xff]  ;;  %v322_v9 = vld [vmem:[%s2530_s1 + $0x1b8] sm:$0xff]  ;;  %v1203_v10 = vpack.c.bf16 %v290_v7, %v289_v6  ;;  %v291_v12 = vld [vmem:[%s2530_s1 + $0xc0] sm:$0xff] }
  0x12   :  { %1229 = vmatprep.subr.bf16.mxu0 %v1330_v0  ;;  %v1251_v11 = vpack.c.bf16 %v322_v9, %v321_v8  ;;  %v292_v13 = vld [vmem:[%s2530_s1 + $0xc8] sm:$0xff]  ;;  %v323_v14 = vld [vmem:[%s2530_s1 + $0x1c0] sm:$0xff]  ;;  %v293_v18 = vld [vmem:[%s2530_s1 + $0xd0] sm:$0xff] }
  0x13   :  { %v324_v15 = vld [vmem:[%s2530_s1 + $0x1c8] sm:$0xff]  ;;  %v1206_v16 = vpack.c.bf16 %v292_v13, %v291_v12  ;;  %v294_v19 = vld [vmem:[%s2530_s1 + $0xd8] sm:$0xff]  ;;  %v325_v20 = vld [vmem:[%s2530_s1 + $0x1d0] sm:$0xff] }
  0x14   :  { %1183 = vmatpush1.bf16.msra.mxu1 %v1182_v29  ;;  %v1254_v17 = vpack.c.bf16 %v324_v15, %v323_v14  ;;  %v326_v21 = vld [vmem:[%s2530_s1 + $0x1d8] sm:$0xff]  ;;  %v1209_v22 = vpack.c.bf16 %v294_v19, %v293_v18  ;;  %v295_v24 = vld [vmem:[%s2530_s1 + $0xe0] sm:$0xff]  ;;  %v296_v25 = vld [vmem:[%s2530_s1 + $0xe8] sm:$0xff] }
  0x15   :  { %1231 = vmatpush1.bf16.msra.mxu0 %v1230_v30  ;;  %1184 = vmatprep.subr.bf16.mxu1 %v1330_v0  ;;  %v1257_v23 = vpack.c.bf16 %v326_v21, %v325_v20  ;;  %v327_v26 = vld [vmem:[%s2530_s1 + $0x1e0] sm:$0xff]  ;;  %v328_v27 = vld [vmem:[%s2530_s1 + $0x1e8] sm:$0xff]  ;;  %v1212_v28 = vpack.c.bf16 %v296_v25, %v295_v24  ;;  %v297_v30 = vld [vmem:[%s2530_s1 + $0xf0] sm:$0xff] }
  0x16   :  { %1232 = vmatprep.subr.bf16.mxu0 %v1330_v0  ;;  %v1260_v29 = vpack.c.bf16 %v328_v27, %v327_v26  ;;  %v298_v31 = vld [vmem:[%s2530_s1 + $0xf8] sm:$0xff]  ;;  %v329_v32 = vld [vmem:[%s2530_s1 + $0x1f0] sm:$0xff]  ;;  %v16_v38 = vld [vmem:[%s2531_s0 + $0x28] sm:$0xff] }
  0x17   :  { %v330_v33 = vld [vmem:[%s2530_s1 + $0x1f8] sm:$0xff]  ;;  %v1215_v34 = vpack.c.bf16 %v298_v31, %v297_v30  ;;  %v13_v37 = vld [vmem:[%s2531_s0 + $0x10] sm:$0xff]  ;;  %v20_v41 = vld [vmem:[%s2531_s0 + $0x48] sm:$0xff] }
  0x18   :  { %1186 = vmatpush1.bf16.msra.mxu1 %v1185_v35  ;;  %v1263_v35 = vpack.c.bf16 %v330_v33, %v329_v32  ;;  %v18_v39 = vld [vmem:[%s2531_s0 + $0x38] sm:$0xff]  ;;  %v17_v40 = vld [vmem:[%s2531_s0 + $0x30] sm:$0xff]  ;;  %v24_v45 = vld [vmem:[%s2531_s0 + $0x68] sm:$0xff] }
  0x19   :  { %1234 = vmatpush1.bf16.msra.mxu0 %v1233_v36  ;;  %1187 = vmatprep.subr.bf16.mxu1 %v1330_v0  ;;  %v11_v36 = vld [vmem:[%s2531_s0] sm:$0xff]  ;;  %v22_v42 = vld [vmem:[%s2531_s0 + $0x58] sm:$0xff]  ;;  %v25_v48 = vld [vmem:[%s2531_s0 + $0x70] sm:$0xff] }
  0x1a   :  { %1235 = vmatprep.subr.bf16.mxu0 %v1330_v0  ;;  %v26_v46 = vld [vmem:[%s2531_s0 + $0x78] sm:$0xff]  ;;  %v23_v47 = vld [vmem:[%s2531_s0 + $0x60] sm:$0xff]  ;;  %v29_v52 = vld [vmem:[%s2531_s0 + $0x90] sm:$0xff] }
  0x1b   :  { %v27_v51 = vld [vmem:[%s2531_s0 + $0x80] sm:$0xff]  ;;  %v32_v53 = vld [vmem:[%s2531_s0 + $0xa8] sm:$0xff]  ;;  %v34_v54 = vld [vmem:[%s2531_s0 + $0xb8] sm:$0xff] }
  0x1c   :  { %1189 = vmatpush1.bf16.msra.mxu1 %v1188_v43  ;;  %v19_v43 = vld [vmem:[%s2531_s0 + $0x40] sm:$0xff]  ;;  %v36_v57 = vld [vmem:[%s2531_s0 + $0xc8] sm:$0xff]  ;;  %v38_v58 = vld [vmem:[%s2531_s0 + $0xd8] sm:$0xff] }
  0x1d   :  { %1237 = vmatpush1.bf16.msra.mxu0 %v1236_v44  ;;  %1190 = vmatprep.subr.bf16.mxu1 %v1330_v0  ;;  %v21_v44 = vld [vmem:[%s2531_s0 + $0x50] sm:$0xff]  ;;  %v35_v59 = vld [vmem:[%s2531_s0 + $0xc0] sm:$0xff]  ;;  %v44_v2 = vld [vmem:[%s2531_s0 + $0x108] sm:$0xff] }
  0x1e   :  { %1238 = vmatprep.subr.bf16.mxu0 %v1330_v0  ;;  %v37_v60 = vld [vmem:[%s2531_s0 + $0xd0] sm:$0xff]  ;;  %v39_v63 = vld [vmem:[%s2531_s0 + $0xe0] sm:$0xff]  ;;  %v46_v3 = vld [vmem:[%s2531_s0 + $0x118] sm:$0xff] }
  0x1f   :  { %v41_v1 = vld [vmem:[%s2531_s0 + $0xf0] sm:$0xff]  ;;  %v48_v6 = vld [vmem:[%s2531_s0 + $0x128] sm:$0xff]  ;;  %v50_v7 = vld [vmem:[%s2531_s0 + $0x138] sm:$0xff] }
  0x20   :  { %1192 = vmatpush1.bf16.msra.mxu1 %v1191_v49  ;;  %v28_v49 = vld [vmem:[%s2531_s0 + $0x88] sm:$0xff]  ;;  %v47_v8 = vld [vmem:[%s2531_s0 + $0x120] sm:$0xff]  ;;  %v49_v9 = vld [vmem:[%s2531_s0 + $0x130] sm:$0xff] }
  0x21   :  { %1240 = vmatpush1.bf16.msra.mxu0 %v1239_v50  ;;  %1193 = vmatprep.subr.bf16.mxu1 %v1330_v0  ;;  %v30_v50 = vld [vmem:[%s2531_s0 + $0x98] sm:$0xff]  ;;  %v51_v12 = vld [vmem:[%s2531_s0 + $0x140] sm:$0xff]  ;;  %v53_v13 = vld [vmem:[%s2531_s0 + $0x150] sm:$0xff] }
  0x22   :  { %1241 = vmatprep.subr.bf16.mxu0 %v1330_v0  ;;  %v56_v14 = vld [vmem:[%s2531_s0 + $0x168] sm:$0xff]  ;;  %v58_v15 = vld [vmem:[%s2531_s0 + $0x178] sm:$0xff]  ;;  %v59_v20 = vld [vmem:[%s2531_s0 + $0x180] sm:$0xff] }
  0x23   :  { %v60_v18 = vld [vmem:[%s2531_s0 + $0x188] sm:$0xff]  ;;  %v62_v19 = vld [vmem:[%s2531_s0 + $0x198] sm:$0xff]  ;;  %v61_v21 = vld [vmem:[%s2531_s0 + $0x190] sm:$0xff] }
  0x24   :  { %1195 = vmatpush1.bf16.msra.mxu1 %v1194_v55  ;;  %v31_v55 = vld [vmem:[%s2531_s0 + $0xa0] sm:$0xff]  ;;  %v65_v25 = vld [vmem:[%s2531_s0 + $0x1b0] sm:$0xff]  ;;  %v68_v26 = vld [vmem:[%s2531_s0 + $0x1c8] sm:$0xff] }
  0x25   :  { %1243 = vmatpush1.bf16.msra.mxu0 %v1242_v56  ;;  %1196 = vmatprep.subr.bf16.mxu1 %v1330_v0  ;;  %v33_v56 = vld [vmem:[%s2531_s0 + $0xb0] sm:$0xff]  ;;  %v63_v24 = vld [vmem:[%s2531_s0 + $0x1a0] sm:$0xff]  ;;  %v70_v27 = vld [vmem:[%s2531_s0 + $0x1d8] sm:$0xff] }
  0x26   :  { %1244 = vmatprep.subr.bf16.mxu0 %v1330_v0  ;;  %v72_v30 = vld [vmem:[%s2531_s0 + $0x1e8] sm:$0xff]  ;;  %v74_v31 = vld [vmem:[%s2531_s0 + $0x1f8] sm:$0xff]  ;;  %v71_v32 = vld [vmem:[%s2531_s0 + $0x1e0] sm:$0xff] }
  0x27   :  { %v73_v33 = vld [vmem:[%s2531_s0 + $0x1f0] sm:$0xff] }
  0x28   :  { %1198 = vmatpush1.bf16.msra.mxu1 %v1197_v61  ;;  %v40_v61 = vld [vmem:[%s2531_s0 + $0xe8] sm:$0xff] }
  0x29   :  { %1246 = vmatpush1.bf16.msra.mxu0 %v1245_v62  ;;  %1199 = vmatprep.subr.bf16.mxu1 %v1330_v0  ;;  %v42_v62 = vld [vmem:[%s2531_s0 + $0xf8] sm:$0xff] }
  0x2a   :  { %1247 = vmatprep.subr.bf16.mxu0 %v1330_v0 }
  0x2c   :  { %1201 = vmatpush1.bf16.msra.mxu1 %v1200_v4  ;;  %v43_v4 = vld [vmem:[%s2531_s0 + $0x100] sm:$0xff] }
  0x2d   :  { %1249 = vmatpush1.bf16.msra.mxu0 %v1248_v5  ;;  %1202 = vmatprep.subr.bf16.mxu1 %v1330_v0  ;;  %v45_v5 = vld [vmem:[%s2531_s0 + $0x110] sm:$0xff] }
  0x2e   :  { %1250 = vmatprep.subr.bf16.mxu0 %v1330_v0 }
  0x30   :  { %1204 = vmatpush1.bf16.msra.mxu1 %v1203_v10  ;;  %v52_v10 = vld [vmem:[%s2531_s0 + $0x148] sm:$0xff] }
  0x31   :  { %1252 = vmatpush1.bf16.msra.mxu0 %v1251_v11  ;;  %1205 = vmatprep.subr.bf16.mxu1 %v1330_v0  ;;  %v54_v11 = vld [vmem:[%s2531_s0 + $0x158] sm:$0xff] }
  0x32   :  { %1253 = vmatprep.subr.bf16.mxu0 %v1330_v0 }
  0x34   :  { %1207 = vmatpush1.bf16.msra.mxu1 %v1206_v16  ;;  %v55_v16 = vld [vmem:[%s2531_s0 + $0x160] sm:$0xff] }
  0x35   :  { %1255 = vmatpush1.bf16.msra.mxu0 %v1254_v17  ;;  %1208 = vmatprep.subr.bf16.mxu1 %v1330_v0  ;;  %v57_v17 = vld [vmem:[%s2531_s0 + $0x170] sm:$0xff] }
  0x36   :  { %1256 = vmatprep.subr.bf16.mxu0 %v1330_v0 }
  0x38   :  { %1210 = vmatpush1.bf16.msra.mxu1 %v1209_v22  ;;  %v64_v22 = vld [vmem:[%s2531_s0 + $0x1a8] sm:$0xff] }
  0x39   :  { %1258 = vmatpush1.bf16.msra.mxu0 %v1257_v23  ;;  %1211 = vmatprep.subr.bf16.mxu1 %v1330_v0  ;;  %v66_v23 = vld [vmem:[%s2531_s0 + $0x1b8] sm:$0xff] }
  0x3a   :  { %1259 = vmatprep.subr.bf16.mxu0 %v1330_v0 }
  0x3c   :  { %1213 = vmatpush1.bf16.msra.mxu1 %v1212_v28  ;;  %v67_v28 = vld [vmem:[%s2531_s0 + $0x1c0] sm:$0xff] }
  0x3d   :  { %1261 = vmatpush1.bf16.msra.mxu0 %v1260_v29  ;;  %1214 = vmatprep.subr.bf16.mxu1 %v1330_v0  ;;  %v69_v29 = vld [vmem:[%s2531_s0 + $0x1d0] sm:$0xff] }
  0x3e   :  { %1262 = vmatprep.subr.bf16.mxu0 %v1330_v0  ;;  %v15_v0 = vld [vmem:[%s2531_s0 + $0x20] sm:$0xff] }
  0x40   :  { %1216 = vmatpush1.bf16.msra.mxu1 %v1215_v34  ;;  %v76_v34 = vld [vmem:[%s2531_s0 + $0x208] sm:$0xff] }
  0x41   :  { %1264 = vmatpush1.bf16.msra.mxu0 %v1263_v35  ;;  %v78_v35 = vld [vmem:[%s2531_s0 + $0x218] sm:$0xff] }
  0x43   :  { %396 = vmatmul.mubr.f32.vlgmr.msra.gmra.mrb[0].mxu1 %v11_v36  ;;  %v75_v36 = vld [vmem:[%s2531_s0 + $0x200] sm:$0xff] }
  0x44   :  { %781 = vmatmul.mubr.f32.vlgmr.msra.gmra.mrb[0].mxu0 %v13_v37  ;;  %400 = vmatprep.mubr.f32.mxu1 %v16_v38  ;;  %v77_v37 = vld [vmem:[%s2531_s0 + $0x210] sm:$0xff]  ;;  %v80_v38 = vld [vmem:[%s2531_s0 + $0x228] sm:$0xff] }
  0x45   :  { %785 = vmatprep.mubr.f32.mxu0 %v18_v39  ;;  %v82_v39 = vld [vmem:[%s2531_s0 + $0x238] sm:$0xff] }
  0x47   :  { %401 = vmatmul.mubr.f32.gmra.mrb[2].mxu1 %v15_v0  ;;  %v79_v0 = vld [vmem:[%s2531_s0 + $0x220] sm:$0xff] }
  0x48   :  { %786 = vmatmul.mubr.f32.gmra.mrb[2].mxu0 %v17_v40  ;;  %405 = vmatprep.mubr.f32.mxu1 %v20_v41  ;;  %v81_v40 = vld [vmem:[%s2531_s0 + $0x230] sm:$0xff]  ;;  %v84_v41 = vld [vmem:[%s2531_s0 + $0x248] sm:$0xff] }
  0x49   :  { %790 = vmatprep.mubr.f32.mxu0 %v22_v42  ;;  %v86_v42 = vld [vmem:[%s2531_s0 + $0x258] sm:$0xff] }
  0x4b   :  { %406 = vmatmul.mubr.f32.gmra.mrb[4].mxu1 %v19_v43  ;;  %v83_v43 = vld [vmem:[%s2531_s0 + $0x240] sm:$0xff] }
  0x4c   :  { %791 = vmatmul.mubr.f32.gmra.mrb[4].mxu0 %v21_v44  ;;  %410 = vmatprep.mubr.f32.mxu1 %v24_v45  ;;  %v85_v44 = vld [vmem:[%s2531_s0 + $0x250] sm:$0xff]  ;;  %v88_v45 = vld [vmem:[%s2531_s0 + $0x268] sm:$0xff] }
  0x4d   :  { %795 = vmatprep.mubr.f32.mxu0 %v26_v46  ;;  %v90_v46 = vld [vmem:[%s2531_s0 + $0x278] sm:$0xff] }
  0x4f   :  { %411 = vmatmul.mubr.f32.gmra.mrb[6].mxu1 %v23_v47  ;;  %v87_v47 = vld [vmem:[%s2531_s0 + $0x260] sm:$0xff] }
  0x50   :  { %796 = vmatmul.mubr.f32.gmra.mrb[6].mxu0 %v25_v48  ;;  %415 = vmatprep.mubr.f32.mxu1 %v28_v49  ;;  %v89_v48 = vld [vmem:[%s2531_s0 + $0x270] sm:$0xff]  ;;  %v92_v49 = vld [vmem:[%s2531_s0 + $0x288] sm:$0xff] }
  0x51   :  { %800 = vmatprep.mubr.f32.mxu0 %v30_v50  ;;  %v94_v50 = vld [vmem:[%s2531_s0 + $0x298] sm:$0xff] }
  0x53   :  { %416 = vmatmul.mubr.f32.gmra.mrb[8].mxu1 %v27_v51  ;;  %v91_v51 = vld [vmem:[%s2531_s0 + $0x280] sm:$0xff] }
  0x54   :  { %801 = vmatmul.mubr.f32.gmra.mrb[8].mxu0 %v29_v52  ;;  %420 = vmatprep.mubr.f32.mxu1 %v32_v53  ;;  %v93_v52 = vld [vmem:[%s2531_s0 + $0x290] sm:$0xff]  ;;  %v96_v53 = vld [vmem:[%s2531_s0 + $0x2a8] sm:$0xff] }
  0x55   :  { %805 = vmatprep.mubr.f32.mxu0 %v34_v54  ;;  %v98_v54 = vld [vmem:[%s2531_s0 + $0x2b8] sm:$0xff] }
  0x57   :  { %421 = vmatmul.mubr.f32.gmra.mrb[10].mxu1 %v31_v55  ;;  %v95_v55 = vld [vmem:[%s2531_s0 + $0x2a0] sm:$0xff] }
  0x58   :  { %806 = vmatmul.mubr.f32.gmra.mrb[10].mxu0 %v33_v56  ;;  %425 = vmatprep.mubr.f32.mxu1 %v36_v57  ;;  %v97_v56 = vld [vmem:[%s2531_s0 + $0x2b0] sm:$0xff]  ;;  %v100_v57 = vld [vmem:[%s2531_s0 + $0x2c8] sm:$0xff] }
  0x59   :  { %810 = vmatprep.mubr.f32.mxu0 %v38_v58  ;;  %v102_v58 = vld [vmem:[%s2531_s0 + $0x2d8] sm:$0xff] }
  0x5b   :  { %426 = vmatmul.mubr.f32.gmra.mrb[12].mxu1 %v35_v59  ;;  %v99_v59 = vld [vmem:[%s2531_s0 + $0x2c0] sm:$0xff] }
  0x5c   :  { %811 = vmatmul.mubr.f32.gmra.mrb[12].mxu0 %v37_v60  ;;  %430 = vmatprep.mubr.f32.mxu1 %v40_v61  ;;  %v101_v60 = vld [vmem:[%s2531_s0 + $0x2d0] sm:$0xff]  ;;  %v104_v61 = vld [vmem:[%s2531_s0 + $0x2e8] sm:$0xff] }
  0x5d   :  { %815 = vmatprep.mubr.f32.mxu0 %v42_v62  ;;  %v106_v62 = vld [vmem:[%s2531_s0 + $0x2f8] sm:$0xff] }
  0x5f   :  { %431 = vmatmul.mubr.f32.gmra.mrb[14].mxu1 %v39_v63  ;;  %v103_v63 = vld [vmem:[%s2531_s0 + $0x2e0] sm:$0xff] }
  0x60   :  { %816 = vmatmul.mubr.f32.gmra.mrb[14].mxu0 %v41_v1  ;;  %435 = vmatprep.mubr.f32.mxu1 %v44_v2  ;;  %v105_v1 = vld [vmem:[%s2531_s0 + $0x2f0] sm:$0xff]  ;;  %v108_v2 = vld [vmem:[%s2531_s0 + $0x308] sm:$0xff] }
  0x61   :  { %820 = vmatprep.mubr.f32.mxu0 %v46_v3  ;;  %v110_v3 = vld [vmem:[%s2531_s0 + $0x318] sm:$0xff] }
  0x63   :  { %436 = vmatmul.mubr.f32.gmra.mrb[16].mxu1 %v43_v4  ;;  %v107_v4 = vld [vmem:[%s2531_s0 + $0x300] sm:$0xff] }
  0x64   :  { %821 = vmatmul.mubr.f32.gmra.mrb[16].mxu0 %v45_v5  ;;  %440 = vmatprep.mubr.f32.mxu1 %v48_v6  ;;  %v109_v5 = vld [vmem:[%s2531_s0 + $0x310] sm:$0xff]  ;;  %v112_v6 = vld [vmem:[%s2531_s0 + $0x328] sm:$0xff] }
  0x65   :  { %825 = vmatprep.mubr.f32.mxu0 %v50_v7  ;;  %v114_v7 = vld [vmem:[%s2531_s0 + $0x338] sm:$0xff] }
  0x67   :  { %441 = vmatmul.mubr.f32.gmra.mrb[18].mxu1 %v47_v8  ;;  %v111_v8 = vld [vmem:[%s2531_s0 + $0x320] sm:$0xff] }
  0x68   :  { %826 = vmatmul.mubr.f32.gmra.mrb[18].mxu0 %v49_v9  ;;  %445 = vmatprep.mubr.f32.mxu1 %v52_v10  ;;  %v113_v9 = vld [vmem:[%s2531_s0 + $0x330] sm:$0xff]  ;;  %v116_v10 = vld [vmem:[%s2531_s0 + $0x348] sm:$0xff] }
  0x69   :  { %830 = vmatprep.mubr.f32.mxu0 %v54_v11  ;;  %v118_v11 = vld [vmem:[%s2531_s0 + $0x358] sm:$0xff] }
  0x6b   :  { %446 = vmatmul.mubr.f32.gmra.mrb[20].mxu1 %v51_v12  ;;  %v115_v12 = vld [vmem:[%s2531_s0 + $0x340] sm:$0xff] }
  0x6c   :  { %831 = vmatmul.mubr.f32.gmra.mrb[20].mxu0 %v53_v13  ;;  %450 = vmatprep.mubr.f32.mxu1 %v56_v14  ;;  %v117_v13 = vld [vmem:[%s2531_s0 + $0x350] sm:$0xff]  ;;  %v120_v14 = vld [vmem:[%s2531_s0 + $0x368] sm:$0xff] }
  0x6d   :  { %835 = vmatprep.mubr.f32.mxu0 %v58_v15  ;;  %v122_v15 = vld [vmem:[%s2531_s0 + $0x378] sm:$0xff] }
  0x6f   :  { %451 = vmatmul.mubr.f32.gmra.mrb[22].mxu1 %v55_v16  ;;  %v119_v16 = vld [vmem:[%s2531_s0 + $0x360] sm:$0xff] }
  0x70   :  { %836 = vmatmul.mubr.f32.gmra.mrb[22].mxu0 %v57_v17  ;;  %455 = vmatprep.mubr.f32.mxu1 %v60_v18  ;;  %v121_v17 = vld [vmem:[%s2531_s0 + $0x370] sm:$0xff]  ;;  %v124_v18 = vld [vmem:[%s2531_s0 + $0x388] sm:$0xff] }
  0x71   :  { %840 = vmatprep.mubr.f32.mxu0 %v62_v19  ;;  %v126_v19 = vld [vmem:[%s2531_s0 + $0x398] sm:$0xff] }
  0x73   :  { %456 = vmatmul.mubr.f32.gmra.mrb[24].mxu1 %v59_v20  ;;  %v123_v20 = vld [vmem:[%s2531_s0 + $0x380] sm:$0xff] }
  0x74   :  { %841 = vmatmul.mubr.f32.gmra.mrb[24].mxu0 %v61_v21  ;;  %460 = vmatprep.mubr.f32.mxu1 %v64_v22  ;;  %v125_v21 = vld [vmem:[%s2531_s0 + $0x390] sm:$0xff]  ;;  %v128_v22 = vld [vmem:[%s2531_s0 + $0x3a8] sm:$0xff] }
  0x75   :  { %845 = vmatprep.mubr.f32.mxu0 %v66_v23  ;;  %v130_v23 = vld [vmem:[%s2531_s0 + $0x3b8] sm:$0xff] }
  0x77   :  { %461 = vmatmul.mubr.f32.gmra.mrb[26].mxu1 %v63_v24  ;;  %v127_v24 = vld [vmem:[%s2531_s0 + $0x3a0] sm:$0xff] }
  0x78   :  { %846 = vmatmul.mubr.f32.gmra.mrb[26].mxu0 %v65_v25  ;;  %465 = vmatprep.mubr.f32.mxu1 %v68_v26  ;;  %v129_v25 = vld [vmem:[%s2531_s0 + $0x3b0] sm:$0xff]  ;;  %v132_v26 = vld [vmem:[%s2531_s0 + $0x3c8] sm:$0xff] }
  0x79   :  { %850 = vmatprep.mubr.f32.mxu0 %v70_v27  ;;  %v134_v27 = vld [vmem:[%s2531_s0 + $0x3d8] sm:$0xff] }
  0x7b   :  { %466 = vmatmul.mubr.f32.gmra.mrb[28].mxu1 %v67_v28  ;;  %v131_v28 = vld [vmem:[%s2531_s0 + $0x3c0] sm:$0xff] }
  0x7c   :  { %851 = vmatmul.mubr.f32.gmra.mrb[28].mxu0 %v69_v29  ;;  %470 = vmatprep.mubr.f32.mxu1 %v72_v30  ;;  %v133_v29 = vld [vmem:[%s2531_s0 + $0x3d0] sm:$0xff]  ;;  %v136_v30 = vld [vmem:[%s2531_s0 + $0x3e8] sm:$0xff] }
  0x7d   :  { %855 = vmatprep.mubr.f32.mxu0 %v74_v31  ;;  %v138_v31 = vld [vmem:[%s2531_s0 + $0x3f8] sm:$0xff] }
  0x7f   :  { %471 = vmatmul.mubr.f32.gmra.mrb[30].mxu1 %v71_v32  ;;  %v135_v32 = vld [vmem:[%s2531_s0 + $0x3e0] sm:$0xff] }
  0x80   :  { %856 = vmatmul.mubr.f32.gmra.mrb[30].mxu0 %v73_v33  ;;  %475 = vmatprep.mubr.f32.mxu1 %v76_v34  ;;  %v137_v33 = vld [vmem:[%s2531_s0 + $0x3f0] sm:$0xff]  ;;  %v140_v34 = vld [vmem:[%s2531_s0 + $0x408] sm:$0xff] }
  0x81   :  { %860 = vmatprep.mubr.f32.mxu0 %v78_v35  ;;  %v142_v35 = vld [vmem:[%s2531_s0 + $0x418] sm:$0xff] }
  0x83   :  { %476 = vmatmul.mubr.f32.gmra.mrb[32].mxu1 %v75_v36  ;;  %v139_v36 = vld [vmem:[%s2531_s0 + $0x400] sm:$0xff] }
  0x84   :  { %861 = vmatmul.mubr.f32.gmra.mrb[32].mxu0 %v77_v37  ;;  %480 = vmatprep.mubr.f32.mxu1 %v80_v38  ;;  %v141_v37 = vld [vmem:[%s2531_s0 + $0x410] sm:$0xff]  ;;  %v144_v38 = vld [vmem:[%s2531_s0 + $0x428] sm:$0xff] }
  0x85   :  { %865 = vmatprep.mubr.f32.mxu0 %v82_v39  ;;  %v146_v39 = vld [vmem:[%s2531_s0 + $0x438] sm:$0xff] }
  0x87   :  { %481 = vmatmul.mubr.f32.gmra.mrb[34].mxu1 %v79_v0  ;;  %v143_v0 = vld [vmem:[%s2531_s0 + $0x420] sm:$0xff] }
  0x88   :  { %866 = vmatmul.mubr.f32.gmra.mrb[34].mxu0 %v81_v40  ;;  %485 = vmatprep.mubr.f32.mxu1 %v84_v41  ;;  %v145_v40 = vld [vmem:[%s2531_s0 + $0x430] sm:$0xff]  ;;  %v148_v41 = vld [vmem:[%s2531_s0 + $0x448] sm:$0xff] }
  0x89   :  { %870 = vmatprep.mubr.f32.mxu0 %v86_v42  ;;  %v150_v42 = vld [vmem:[%s2531_s0 + $0x458] sm:$0xff] }
  0x8b   :  { %486 = vmatmul.mubr.f32.gmra.mrb[36].mxu1 %v83_v43  ;;  %v147_v43 = vld [vmem:[%s2531_s0 + $0x440] sm:$0xff] }
  0x8c   :  { %871 = vmatmul.mubr.f32.gmra.mrb[36].mxu0 %v85_v44  ;;  %490 = vmatprep.mubr.f32.mxu1 %v88_v45  ;;  %v149_v44 = vld [vmem:[%s2531_s0 + $0x450] sm:$0xff]  ;;  %v152_v45 = vld [vmem:[%s2531_s0 + $0x468] sm:$0xff] }
  0x8d   :  { %875 = vmatprep.mubr.f32.mxu0 %v90_v46  ;;  %v154_v46 = vld [vmem:[%s2531_s0 + $0x478] sm:$0xff] }
  0x8f   :  { %491 = vmatmul.mubr.f32.gmra.mrb[38].mxu1 %v87_v47  ;;  %v151_v47 = vld [vmem:[%s2531_s0 + $0x460] sm:$0xff] }
  0x90   :  { %876 = vmatmul.mubr.f32.gmra.mrb[38].mxu0 %v89_v48  ;;  %495 = vmatprep.mubr.f32.mxu1 %v92_v49  ;;  %v153_v48 = vld [vmem:[%s2531_s0 + $0x470] sm:$0xff]  ;;  %v156_v49 = vld [vmem:[%s2531_s0 + $0x488] sm:$0xff] }
  0x91   :  { %880 = vmatprep.mubr.f32.mxu0 %v94_v50  ;;  %v158_v50 = vld [vmem:[%s2531_s0 + $0x498] sm:$0xff] }
  0x93   :  { %496 = vmatmul.mubr.f32.gmra.mrb[40].mxu1 %v91_v51  ;;  %v155_v51 = vld [vmem:[%s2531_s0 + $0x480] sm:$0xff] }
  0x94   :  { %881 = vmatmul.mubr.f32.gmra.mrb[40].mxu0 %v93_v52  ;;  %500 = vmatprep.mubr.f32.mxu1 %v96_v53  ;;  %v157_v52 = vld [vmem:[%s2531_s0 + $0x490] sm:$0xff]  ;;  %v160_v53 = vld [vmem:[%s2531_s0 + $0x4a8] sm:$0xff] }
  0x95   :  { %885 = vmatprep.mubr.f32.mxu0 %v98_v54  ;;  %v162_v54 = vld [vmem:[%s2531_s0 + $0x4b8] sm:$0xff] }
  0x97   :  { %501 = vmatmul.mubr.f32.gmra.mrb[42].mxu1 %v95_v55  ;;  %v159_v55 = vld [vmem:[%s2531_s0 + $0x4a0] sm:$0xff] }
  0x98   :  { %886 = vmatmul.mubr.f32.gmra.mrb[42].mxu0 %v97_v56  ;;  %505 = vmatprep.mubr.f32.mxu1 %v100_v57  ;;  %v161_v56 = vld [vmem:[%s2531_s0 + $0x4b0] sm:$0xff]  ;;  %v164_v57 = vld [vmem:[%s2531_s0 + $0x4c8] sm:$0xff] }
  0x99   :  { %890 = vmatprep.mubr.f32.mxu0 %v102_v58  ;;  %v166_v58 = vld [vmem:[%s2531_s0 + $0x4d8] sm:$0xff] }
  0x9b   :  { %506 = vmatmul.mubr.f32.gmra.mrb[44].mxu1 %v99_v59  ;;  %v163_v59 = vld [vmem:[%s2531_s0 + $0x4c0] sm:$0xff] }
  0x9c   :  { %891 = vmatmul.mubr.f32.gmra.mrb[44].mxu0 %v101_v60  ;;  %510 = vmatprep.mubr.f32.mxu1 %v104_v61  ;;  %v165_v60 = vld [vmem:[%s2531_s0 + $0x4d0] sm:$0xff]  ;;  %v168_v61 = vld [vmem:[%s2531_s0 + $0x4e8] sm:$0xff] }
  0x9d   :  { %895 = vmatprep.mubr.f32.mxu0 %v106_v62  ;;  %v170_v62 = vld [vmem:[%s2531_s0 + $0x4f8] sm:$0xff] }
  0x9f   :  { %511 = vmatmul.mubr.f32.gmra.mrb[46].mxu1 %v103_v63  ;;  %v167_v63 = vld [vmem:[%s2531_s0 + $0x4e0] sm:$0xff] }
  0xa0   :  { %896 = vmatmul.mubr.f32.gmra.mrb[46].mxu0 %v105_v1  ;;  %515 = vmatprep.mubr.f32.mxu1 %v108_v2  ;;  %v169_v1 = vld [vmem:[%s2531_s0 + $0x4f0] sm:$0xff]  ;;  %v172_v2 = vld [vmem:[%s2531_s0 + $0x508] sm:$0xff] }
  0xa1   :  { %900 = vmatprep.mubr.f32.mxu0 %v110_v3  ;;  %v174_v3 = vld [vmem:[%s2531_s0 + $0x518] sm:$0xff] }
  0xa3   :  { %516 = vmatmul.mubr.f32.gmra.mrb[48].mxu1 %v107_v4  ;;  %v171_v4 = vld [vmem:[%s2531_s0 + $0x500] sm:$0xff] }
  0xa4   :  { %901 = vmatmul.mubr.f32.gmra.mrb[48].mxu0 %v109_v5  ;;  %520 = vmatprep.mubr.f32.mxu1 %v112_v6  ;;  %v173_v5 = vld [vmem:[%s2531_s0 + $0x510] sm:$0xff]  ;;  %v176_v6 = vld [vmem:[%s2531_s0 + $0x528] sm:$0xff] }
  0xa5   :  { %905 = vmatprep.mubr.f32.mxu0 %v114_v7  ;;  %v178_v7 = vld [vmem:[%s2531_s0 + $0x538] sm:$0xff] }
  0xa7   :  { %521 = vmatmul.mubr.f32.gmra.mrb[50].mxu1 %v111_v8  ;;  %v175_v8 = vld [vmem:[%s2531_s0 + $0x520] sm:$0xff] }
  0xa8   :  { %906 = vmatmul.mubr.f32.gmra.mrb[50].mxu0 %v113_v9  ;;  %525 = vmatprep.mubr.f32.mxu1 %v116_v10  ;;  %v177_v9 = vld [vmem:[%s2531_s0 + $0x530] sm:$0xff]  ;;  %v180_v10 = vld [vmem:[%s2531_s0 + $0x548] sm:$0xff] }
  0xa9   :  { %910 = vmatprep.mubr.f32.mxu0 %v118_v11  ;;  %v182_v11 = vld [vmem:[%s2531_s0 + $0x558] sm:$0xff] }
  0xab   :  { %526 = vmatmul.mubr.f32.gmra.mrb[52].mxu1 %v115_v12  ;;  %v179_v12 = vld [vmem:[%s2531_s0 + $0x540] sm:$0xff] }
  0xac   :  { %911 = vmatmul.mubr.f32.gmra.mrb[52].mxu0 %v117_v13  ;;  %530 = vmatprep.mubr.f32.mxu1 %v120_v14  ;;  %v181_v13 = vld [vmem:[%s2531_s0 + $0x550] sm:$0xff]  ;;  %v184_v14 = vld [vmem:[%s2531_s0 + $0x568] sm:$0xff] }
  0xad   :  { %915 = vmatprep.mubr.f32.mxu0 %v122_v15  ;;  %v186_v15 = vld [vmem:[%s2531_s0 + $0x578] sm:$0xff] }
  0xaf   :  { %531 = vmatmul.mubr.f32.gmra.mrb[54].mxu1 %v119_v16  ;;  %v183_v16 = vld [vmem:[%s2531_s0 + $0x560] sm:$0xff] }
  0xb0   :  { %916 = vmatmul.mubr.f32.gmra.mrb[54].mxu0 %v121_v17  ;;  %535 = vmatprep.mubr.f32.mxu1 %v124_v18  ;;  %v185_v17 = vld [vmem:[%s2531_s0 + $0x570] sm:$0xff]  ;;  %v188_v18 = vld [vmem:[%s2531_s0 + $0x588] sm:$0xff] }
  0xb1   :  { %920 = vmatprep.mubr.f32.mxu0 %v126_v19  ;;  %v190_v19 = vld [vmem:[%s2531_s0 + $0x598] sm:$0xff] }
  0xb3   :  { %536 = vmatmul.mubr.f32.gmra.mrb[56].mxu1 %v123_v20  ;;  %v187_v20 = vld [vmem:[%s2531_s0 + $0x580] sm:$0xff] }
  0xb4   :  { %921 = vmatmul.mubr.f32.gmra.mrb[56].mxu0 %v125_v21  ;;  %540 = vmatprep.mubr.f32.mxu1 %v128_v22  ;;  %v189_v21 = vld [vmem:[%s2531_s0 + $0x590] sm:$0xff]  ;;  %v192_v22 = vld [vmem:[%s2531_s0 + $0x5a8] sm:$0xff] }
  0xb5   :  { %925 = vmatprep.mubr.f32.mxu0 %v130_v23  ;;  %v194_v23 = vld [vmem:[%s2531_s0 + $0x5b8] sm:$0xff] }
  0xb7   :  { %541 = vmatmul.mubr.f32.gmra.mrb[58].mxu1 %v127_v24  ;;  %v191_v24 = vld [vmem:[%s2531_s0 + $0x5a0] sm:$0xff] }
  0xb8   :  { %926 = vmatmul.mubr.f32.gmra.mrb[58].mxu0 %v129_v25  ;;  %545 = vmatprep.mubr.f32.mxu1 %v132_v26  ;;  %v193_v25 = vld [vmem:[%s2531_s0 + $0x5b0] sm:$0xff]  ;;  %v196_v26 = vld [vmem:[%s2531_s0 + $0x5c8] sm:$0xff] }
  0xb9   :  { %930 = vmatprep.mubr.f32.mxu0 %v134_v27  ;;  %v198_v27 = vld [vmem:[%s2531_s0 + $0x5d8] sm:$0xff] }
  0xbb   :  { %546 = vmatmul.mubr.f32.gmra.mrb[60].mxu1 %v131_v28  ;;  %v195_v28 = vld [vmem:[%s2531_s0 + $0x5c0] sm:$0xff] }
  0xbc   :  { %931 = vmatmul.mubr.f32.gmra.mrb[60].mxu0 %v133_v29  ;;  %550 = vmatprep.mubr.f32.mxu1 %v136_v30  ;;  %v197_v29 = vld [vmem:[%s2531_s0 + $0x5d0] sm:$0xff]  ;;  %v200_v30 = vld [vmem:[%s2531_s0 + $0x5e8] sm:$0xff] }
  0xbd   :  { %935 = vmatprep.mubr.f32.mxu0 %v138_v31  ;;  %v202_v31 = vld [vmem:[%s2531_s0 + $0x5f8] sm:$0xff] }
  0xbf   :  { %551 = vmatmul.mubr.f32.gmra.mrb[62].mxu1 %v135_v32  ;;  %v199_v32 = vld [vmem:[%s2531_s0 + $0x5e0] sm:$0xff] }
  0xc0   :  { %936 = vmatmul.mubr.f32.gmra.mrb[62].mxu0 %v137_v33  ;;  %555 = vmatprep.mubr.f32.mxu1 %v140_v34  ;;  %v201_v33 = vld [vmem:[%s2531_s0 + $0x5f0] sm:$0xff]  ;;  %v204_v34 = vld [vmem:[%s2531_s0 + $0x608] sm:$0xff] }
  0xc1   :  { %940 = vmatprep.mubr.f32.mxu0 %v142_v35  ;;  %v206_v35 = vld [vmem:[%s2531_s0 + $0x618] sm:$0xff] }
  0xc3   :  { %556 = vmatmul.mubr.f32.gmra.mrb[64].mxu1 %v139_v36  ;;  %v203_v36 = vld [vmem:[%s2531_s0 + $0x600] sm:$0xff] }
  0xc4   :  { %941 = vmatmul.mubr.f32.gmra.mrb[64].mxu0 %v141_v37  ;;  %560 = vmatprep.mubr.f32.mxu1 %v144_v38  ;;  %v205_v37 = vld [vmem:[%s2531_s0 + $0x610] sm:$0xff]  ;;  %v208_v38 = vld [vmem:[%s2531_s0 + $0x628] sm:$0xff] }
  0xc5   :  { %945 = vmatprep.mubr.f32.mxu0 %v146_v39  ;;  %v210_v39 = vld [vmem:[%s2531_s0 + $0x638] sm:$0xff] }
  0xc7   :  { %561 = vmatmul.mubr.f32.gmra.mrb[66].mxu1 %v143_v0  ;;  %v207_v0 = vld [vmem:[%s2531_s0 + $0x620] sm:$0xff] }
  0xc8   :  { %946 = vmatmul.mubr.f32.gmra.mrb[66].mxu0 %v145_v40  ;;  %565 = vmatprep.mubr.f32.mxu1 %v148_v41  ;;  %v209_v40 = vld [vmem:[%s2531_s0 + $0x630] sm:$0xff]  ;;  %v212_v41 = vld [vmem:[%s2531_s0 + $0x648] sm:$0xff] }
  0xc9   :  { %950 = vmatprep.mubr.f32.mxu0 %v150_v42  ;;  %v214_v42 = vld [vmem:[%s2531_s0 + $0x658] sm:$0xff] }
  0xcb   :  { %566 = vmatmul.mubr.f32.gmra.mrb[68].mxu1 %v147_v43  ;;  %v211_v43 = vld [vmem:[%s2531_s0 + $0x640] sm:$0xff] }
  0xcc   :  { %951 = vmatmul.mubr.f32.gmra.mrb[68].mxu0 %v149_v44  ;;  %570 = vmatprep.mubr.f32.mxu1 %v152_v45  ;;  %v213_v44 = vld [vmem:[%s2531_s0 + $0x650] sm:$0xff]  ;;  %v216_v45 = vld [vmem:[%s2531_s0 + $0x668] sm:$0xff] }
  0xcd   :  { %955 = vmatprep.mubr.f32.mxu0 %v154_v46  ;;  %v218_v46 = vld [vmem:[%s2531_s0 + $0x678] sm:$0xff] }
  0xcf   :  { %571 = vmatmul.mubr.f32.gmra.mrb[70].mxu1 %v151_v47  ;;  %v215_v47 = vld [vmem:[%s2531_s0 + $0x660] sm:$0xff] }
  0xd0   :  { %956 = vmatmul.mubr.f32.gmra.mrb[70].mxu0 %v153_v48  ;;  %575 = vmatprep.mubr.f32.mxu1 %v156_v49  ;;  %v217_v48 = vld [vmem:[%s2531_s0 + $0x670] sm:$0xff]  ;;  %v220_v49 = vld [vmem:[%s2531_s0 + $0x688] sm:$0xff] }
  0xd1   :  { %960 = vmatprep.mubr.f32.mxu0 %v158_v50  ;;  %v222_v50 = vld [vmem:[%s2531_s0 + $0x698] sm:$0xff] }
  0xd3   :  { %576 = vmatmul.mubr.f32.gmra.mrb[72].mxu1 %v155_v51  ;;  %v219_v51 = vld [vmem:[%s2531_s0 + $0x680] sm:$0xff] }
  0xd4   :  { %961 = vmatmul.mubr.f32.gmra.mrb[72].mxu0 %v157_v52  ;;  %580 = vmatprep.mubr.f32.mxu1 %v160_v53  ;;  %v221_v52 = vld [vmem:[%s2531_s0 + $0x690] sm:$0xff]  ;;  %v224_v53 = vld [vmem:[%s2531_s0 + $0x6a8] sm:$0xff] }
  0xd5   :  { %965 = vmatprep.mubr.f32.mxu0 %v162_v54  ;;  %v226_v54 = vld [vmem:[%s2531_s0 + $0x6b8] sm:$0xff] }
  0xd7   :  { %581 = vmatmul.mubr.f32.gmra.mrb[74].mxu1 %v159_v55  ;;  %v223_v55 = vld [vmem:[%s2531_s0 + $0x6a0] sm:$0xff] }
  0xd8   :  { %966 = vmatmul.mubr.f32.gmra.mrb[74].mxu0 %v161_v56  ;;  %585 = vmatprep.mubr.f32.mxu1 %v164_v57  ;;  %v225_v56 = vld [vmem:[%s2531_s0 + $0x6b0] sm:$0xff]  ;;  %v228_v57 = vld [vmem:[%s2531_s0 + $0x6c8] sm:$0xff] }
  0xd9   :  { %970 = vmatprep.mubr.f32.mxu0 %v166_v58 }
  0xdb   :  { %586 = vmatmul.mubr.f32.gmra.mrb[76].mxu1 %v163_v59  ;;  %v230_v59 = vld [vmem:[%s2531_s0 + $0x6d8] sm:$0xff] }
  0xdc   :  { %971 = vmatmul.mubr.f32.gmra.mrb[76].mxu0 %v165_v60  ;;  %590 = vmatprep.mubr.f32.mxu1 %v168_v61 }
  0xdd   :  { %975 = vmatprep.mubr.f32.mxu0 %v170_v62 }
  0xdf   :  { %591 = vmatmul.mubr.f32.gmra.mrb[78].mxu1 %v167_v63 }
  0xe0   :  { %976 = vmatmul.mubr.f32.gmra.mrb[78].mxu0 %v169_v1  ;;  %595 = vmatprep.mubr.f32.mxu1 %v172_v2  ;;  %v227_v1 = vld [vmem:[%s2531_s0 + $0x6c0] sm:$0xff]  ;;  %v229_v2 = vld [vmem:[%s2531_s0 + $0x6d0] sm:$0xff] }
  0xe1   :  { %980 = vmatprep.mubr.f32.mxu0 %v174_v3  ;;  %v232_v3 = vld [vmem:[%s2531_s0 + $0x6e8] sm:$0xff] }
  0xe3   :  { %596 = vmatmul.mubr.f32.gmra.mrb[80].mxu1 %v171_v4 }
  0xe4   :  { %981 = vmatmul.mubr.f32.gmra.mrb[80].mxu0 %v173_v5  ;;  %600 = vmatprep.mubr.f32.mxu1 %v176_v6  ;;  %v234_v5 = vld [vmem:[%s2531_s0 + $0x6f8] sm:$0xff] }
  0xe5   :  { %985 = vmatprep.mubr.f32.mxu0 %v178_v7 }
  0xe7   :  { %601 = vmatmul.mubr.f32.gmra.mrb[82].mxu1 %v175_v8 }
  0xe8   :  { %986 = vmatmul.mubr.f32.gmra.mrb[82].mxu0 %v177_v9  ;;  %605 = vmatprep.mubr.f32.mxu1 %v180_v10  ;;  %v231_v10 = vld [vmem:[%s2531_s0 + $0x6e0] sm:$0xff] }
  0xe9   :  { %990 = vmatprep.mubr.f32.mxu0 %v182_v11  ;;  %v233_v11 = vld [vmem:[%s2531_s0 + $0x6f0] sm:$0xff] }
  0xeb   :  { %606 = vmatmul.mubr.f32.gmra.mrb[84].mxu1 %v179_v12  ;;  %v236_v12 = vld [vmem:[%s2531_s0 + $0x708] sm:$0xff] }
  0xec   :  { %991 = vmatmul.mubr.f32.gmra.mrb[84].mxu0 %v181_v13  ;;  %610 = vmatprep.mubr.f32.mxu1 %v184_v14  ;;  %v238_v14 = vld [vmem:[%s2531_s0 + $0x718] sm:$0xff] }
  0xed   :  { %995 = vmatprep.mubr.f32.mxu0 %v186_v15 }
  0xef   :  { %611 = vmatmul.mubr.f32.gmra.mrb[86].mxu1 %v183_v16 }
  0xf0   :  { %996 = vmatmul.mubr.f32.gmra.mrb[86].mxu0 %v185_v17  ;;  %615 = vmatprep.mubr.f32.mxu1 %v188_v18 }
  0xf1   :  { %1000 = vmatprep.mubr.f32.mxu0 %v190_v19  ;;  %v235_v19 = vld [vmem:[%s2531_s0 + $0x700] sm:$0xff] }
  0xf3   :  { %616 = vmatmul.mubr.f32.gmra.mrb[88].mxu1 %v187_v20  ;;  %v237_v20 = vld [vmem:[%s2531_s0 + $0x710] sm:$0xff] }
  0xf4   :  { %1001 = vmatmul.mubr.f32.gmra.mrb[88].mxu0 %v189_v21  ;;  %620 = vmatprep.mubr.f32.mxu1 %v192_v22  ;;  %v240_v21 = vld [vmem:[%s2531_s0 + $0x728] sm:$0xff] }
  0xf5   :  { %1005 = vmatprep.mubr.f32.mxu0 %v194_v23  ;;  %v242_v23 = vld [vmem:[%s2531_s0 + $0x738] sm:$0xff] }
  0xf7   :  { %621 = vmatmul.mubr.f32.gmra.mrb[90].mxu1 %v191_v24 }
  0xf8   :  { %1006 = vmatmul.mubr.f32.gmra.mrb[90].mxu0 %v193_v25  ;;  %625 = vmatprep.mubr.f32.mxu1 %v196_v26 }
  0xf9   :  { %1010 = vmatprep.mubr.f32.mxu0 %v198_v27 }
  0xfb   :  { %626 = vmatmul.mubr.f32.gmra.mrb[92].mxu1 %v195_v28  ;;  %v239_v28 = vld [vmem:[%s2531_s0 + $0x720] sm:$0xff] }
  0xfc   :  { %1011 = vmatmul.mubr.f32.gmra.mrb[92].mxu0 %v197_v29  ;;  %630 = vmatprep.mubr.f32.mxu1 %v200_v30  ;;  %v241_v29 = vld [vmem:[%s2531_s0 + $0x730] sm:$0xff]  ;;  %v244_v30 = vld [vmem:[%s2531_s0 + $0x748] sm:$0xff] }
  0xfd   :  { %1015 = vmatprep.mubr.f32.mxu0 %v202_v31 }
  0xff   :  { %631 = vmatmul.mubr.f32.gmra.mrb[94].mxu1 %v199_v32  ;;  %v246_v32 = vld [vmem:[%s2531_s0 + $0x758] sm:$0xff] }
 0x100   :  { %1016 = vmatmul.mubr.f32.gmra.mrb[94].mxu0 %v201_v33  ;;  %635 = vmatprep.mubr.f32.mxu1 %v204_v34 }
 0x101   :  { %1020 = vmatprep.mubr.f32.mxu0 %v206_v35 }
 0x103   :  { %636 = vmatmul.mubr.f32.gmra.mrb[96].mxu1 %v203_v36 }
 0x104   :  { %1021 = vmatmul.mubr.f32.gmra.mrb[96].mxu0 %v205_v37  ;;  %640 = vmatprep.mubr.f32.mxu1 %v208_v38  ;;  %v243_v37 = vld [vmem:[%s2531_s0 + $0x740] sm:$0xff]  ;;  %v245_v38 = vld [vmem:[%s2531_s0 + $0x750] sm:$0xff] }
 0x105   :  { %1025 = vmatprep.mubr.f32.mxu0 %v210_v39  ;;  %v248_v39 = vld [vmem:[%s2531_s0 + $0x768] sm:$0xff] }
 0x107   :  { %641 = vmatmul.mubr.f32.gmra.mrb[98].mxu1 %v207_v0 }
 0x108   :  { %1026 = vmatmul.mubr.f32.gmra.mrb[98].mxu0 %v209_v40  ;;  %645 = vmatprep.mubr.f32.mxu1 %v212_v41  ;;  %v250_v40 = vld [vmem:[%s2531_s0 + $0x778] sm:$0xff] }
 0x109   :  { %1030 = vmatprep.mubr.f32.mxu0 %v214_v42 }
 0x10b   :  { %646 = vmatmul.mubr.f32.gmra.mrb[100].mxu1 %v211_v43 }
 0x10c   :  { %1031 = vmatmul.mubr.f32.gmra.mrb[100].mxu0 %v213_v44  ;;  %650 = vmatprep.mubr.f32.mxu1 %v216_v45  ;;  %v247_v45 = vld [vmem:[%s2531_s0 + $0x760] sm:$0xff] }
 0x10d   :  { %1035 = vmatprep.mubr.f32.mxu0 %v218_v46  ;;  %v249_v46 = vld [vmem:[%s2531_s0 + $0x770] sm:$0xff] }
 0x10f   :  { %651 = vmatmul.mubr.f32.gmra.mrb[102].mxu1 %v215_v47  ;;  %v252_v47 = vld [vmem:[%s2531_s0 + $0x788] sm:$0xff] }
 0x110   :  { %1036 = vmatmul.mubr.f32.gmra.mrb[102].mxu0 %v217_v48  ;;  %655 = vmatprep.mubr.f32.mxu1 %v220_v49  ;;  %v254_v49 = vld [vmem:[%s2531_s0 + $0x798] sm:$0xff] }
 0x111   :  { %1040 = vmatprep.mubr.f32.mxu0 %v222_v50 }
 0x113   :  { %656 = vmatmul.mubr.f32.gmra.mrb[104].mxu1 %v219_v51 }
 0x114   :  { %1041 = vmatmul.mubr.f32.gmra.mrb[104].mxu0 %v221_v52  ;;  %660 = vmatprep.mubr.f32.mxu1 %v224_v53 }
 0x115   :  { %1045 = vmatprep.mubr.f32.mxu0 %v226_v54  ;;  %v251_v54 = vld [vmem:[%s2531_s0 + $0x780] sm:$0xff] }
 0x116   :  { %v397_v58 = vpop.f32.mrb[0].mxu1 }
 0x117   :  { %v782_v60 = vpop.f32.mrb[0].mxu0  ;;  %v399_v61 = vpop.f32.mrb[1].mxu1  ;;  %661 = vmatmul.mubr.f32.gmra.mrb[106].mxu1 %v223_v55  ;;  %v253_v55 = vld [vmem:[%s2531_s0 + $0x790] sm:$0xff] }
 0x118   :  { %v783_v62 = vadd.f32 %v782_v60, %v397_v58  ;;  %v784_v63 = vpop.f32.mrb[1].mxu0  ;;  %1046 = vmatmul.mubr.f32.gmra.mrb[106].mxu0 %v225_v56  ;;  %665 = vmatprep.mubr.f32.mxu1 %v228_v57  ;;  %v256_v56 = vld [vmem:[%s2531_s0 + $0x7a8] sm:$0xff]  ;;  %v258_v58 = vld [vmem:[%s2531_s0 + $0x7b8] sm:$0xff] }
 0x119   :  { %1050 = vmatprep.mubr.f32.mxu0 %v230_v59  ;;  %v255_v63 = vld [vmem:[%s2531_s0 + $0x7a0] sm:$0xff] }
 0x11a   :  { %1101 = vst [vmem:[%s2532_s2] sm:$0xff] %v783_v62  ;;  %v402_v4 = vpop.f32.mrb[2].mxu1 }
 0x11b   :  { %v787_v6 = vpop.f32.mrb[2].mxu0  ;;  %v404_v7 = vpop.f32.mrb[3].mxu1  ;;  %666 = vmatmul.mubr.f32.gmra.mrb[108].mxu1 %v227_v1  ;;  %v257_v1 = vld [vmem:[%s2531_s0 + $0x7b0] sm:$0xff] }
 0x11c   :  { %v788_v8 = vadd.f32 %v787_v6, %v402_v4  ;;  %v789_v9 = vpop.f32.mrb[3].mxu0  ;;  %1051 = vmatmul.mubr.f32.gmra.mrb[108].mxu0 %v229_v2  ;;  %670 = vmatprep.mubr.f32.mxu1 %v232_v3  ;;  %v260_v2 = vld [vmem:[%s2531_s0 + $0x7c8] sm:$0xff]  ;;  %v262_v4 = vld [vmem:[%s2531_s0 + $0x7d8] sm:$0xff] }
 0x11d   :  { %1055 = vmatprep.mubr.f32.mxu0 %v234_v5  ;;  %v259_v9 = vld [vmem:[%s2531_s0 + $0x7c0] sm:$0xff] }
 0x11e   :  { %1102 = vst [vmem:[%s2532_s2 + $0x8] sm:$0xff] %v788_v8  ;;  %v407_v13 = vpop.f32.mrb[4].mxu1 }
 0x11f   :  { %v792_v15 = vpop.f32.mrb[4].mxu0  ;;  %v409_v16 = vpop.f32.mrb[5].mxu1  ;;  %671 = vmatmul.mubr.f32.gmra.mrb[110].mxu1 %v231_v10  ;;  %v261_v10 = vld [vmem:[%s2531_s0 + $0x7d0] sm:$0xff] }
 0x120   :  { %v793_v17 = vadd.f32 %v792_v15, %v407_v13  ;;  %v794_v18 = vpop.f32.mrb[5].mxu0  ;;  %1056 = vmatmul.mubr.f32.gmra.mrb[110].mxu0 %v233_v11  ;;  %675 = vmatprep.mubr.f32.mxu1 %v236_v12  ;;  %v264_v11 = vld [vmem:[%s2531_s0 + $0x7e8] sm:$0xff]  ;;  %v266_v13 = vld [vmem:[%s2531_s0 + $0x7f8] sm:$0xff] }
 0x121   :  { %1060 = vmatprep.mubr.f32.mxu0 %v238_v14  ;;  %v263_v18 = vld [vmem:[%s2531_s0 + $0x7e0] sm:$0xff] }
 0x122   :  { %1103 = vst [vmem:[%s2532_s2 + $0x10] sm:$0xff] %v793_v17  ;;  %v412_v22 = vpop.f32.mrb[6].mxu1 }
 0x123   :  { %v797_v24 = vpop.f32.mrb[6].mxu0  ;;  %v414_v25 = vpop.f32.mrb[7].mxu1  ;;  %676 = vmatmul.mubr.f32.gmra.mrb[112].mxu1 %v235_v19  ;;  %v265_v19 = vld [vmem:[%s2531_s0 + $0x7f0] sm:$0xff] }
 0x124   :  { %v798_v26 = vadd.f32 %v797_v24, %v412_v22  ;;  %v799_v27 = vpop.f32.mrb[7].mxu0  ;;  %1061 = vmatmul.mubr.f32.gmra.mrb[112].mxu0 %v237_v20  ;;  %680 = vmatprep.mubr.f32.mxu1 %v240_v21 }
 0x125   :  { %1065 = vmatprep.mubr.f32.mxu0 %v242_v23 }
 0x126   :  { %1104 = vst [vmem:[%s2532_s2 + $0x18] sm:$0xff] %v798_v26  ;;  %v417_v31 = vpop.f32.mrb[8].mxu1 }
 0x127   :  { %v802_v33 = vpop.f32.mrb[8].mxu0  ;;  %v419_v34 = vpop.f32.mrb[9].mxu1  ;;  %681 = vmatmul.mubr.f32.gmra.mrb[114].mxu1 %v239_v28 }
 0x128   :  { %v803_v35 = vadd.f32 %v802_v33, %v417_v31  ;;  %v804_v36 = vpop.f32.mrb[9].mxu0  ;;  %1066 = vmatmul.mubr.f32.gmra.mrb[114].mxu0 %v241_v29  ;;  %685 = vmatprep.mubr.f32.mxu1 %v244_v30 }
 0x129   :  { %1070 = vmatprep.mubr.f32.mxu0 %v246_v32 }
 0x12a   :  { %1105 = vst [vmem:[%s2532_s2 + $0x20] sm:$0xff] %v803_v35  ;;  %v422_v0 = vpop.f32.mrb[10].mxu1 }
 0x12b   :  { %v807_v41 = vpop.f32.mrb[10].mxu0  ;;  %v424_v42 = vpop.f32.mrb[11].mxu1  ;;  %686 = vmatmul.mubr.f32.gmra.mrb[116].mxu1 %v243_v37 }
 0x12c   :  { %v808_v43 = vadd.f32 %v807_v41, %v422_v0  ;;  %v809_v44 = vpop.f32.mrb[11].mxu0  ;;  %1071 = vmatmul.mubr.f32.gmra.mrb[116].mxu0 %v245_v38  ;;  %690 = vmatprep.mubr.f32.mxu1 %v248_v39 }
 0x12d   :  { %1075 = vmatprep.mubr.f32.mxu0 %v250_v40 }
 0x12e   :  { %1106 = vst [vmem:[%s2532_s2 + $0x28] sm:$0xff] %v808_v43  ;;  %v427_v48 = vpop.f32.mrb[12].mxu1 }
 0x12f   :  { %v812_v50 = vpop.f32.mrb[12].mxu0  ;;  %v429_v51 = vpop.f32.mrb[13].mxu1  ;;  %691 = vmatmul.mubr.f32.gmra.mrb[118].mxu1 %v247_v45 }
 0x130   :  { %v813_v52 = vadd.f32 %v812_v50, %v427_v48  ;;  %v814_v53 = vpop.f32.mrb[13].mxu0  ;;  %1076 = vmatmul.mubr.f32.gmra.mrb[118].mxu0 %v249_v46  ;;  %695 = vmatprep.mubr.f32.mxu1 %v252_v47 }
 0x131   :  { %1080 = vmatprep.mubr.f32.mxu0 %v254_v49 }
 0x132   :  { %1107 = vst [vmem:[%s2532_s2 + $0x30] sm:$0xff] %v813_v52  ;;  %v432_v57 = vpop.f32.mrb[14].mxu1 }
 0x133   :  { %v817_v59 = vpop.f32.mrb[14].mxu0  ;;  %v434_v60 = vpop.f32.mrb[15].mxu1  ;;  %696 = vmatmul.mubr.f32.gmra.mrb[120].mxu1 %v251_v54 }
 0x134   :  { %v818_v61 = vadd.f32 %v817_v59, %v432_v57  ;;  %v819_v62 = vpop.f32.mrb[15].mxu0  ;;  %1081 = vmatmul.mubr.f32.gmra.mrb[120].mxu0 %v253_v55  ;;  %700 = vmatprep.mubr.f32.mxu1 %v256_v56 }
 0x135   :  { %1085 = vmatprep.mubr.f32.mxu0 %v258_v58 }
 0x136   :  { %1108 = vst [vmem:[%s2532_s2 + $0x38] sm:$0xff] %v818_v61  ;;  %v437_v3 = vpop.f32.mrb[16].mxu1 }
 0x137   :  { %v822_v5 = vpop.f32.mrb[16].mxu0  ;;  %v439_v6 = vpop.f32.mrb[17].mxu1  ;;  %701 = vmatmul.mubr.f32.gmra.mrb[122].mxu1 %v255_v63 }
 0x138   :  { %v823_v7 = vadd.f32 %v822_v5, %v437_v3  ;;  %v824_v8 = vpop.f32.mrb[17].mxu0  ;;  %1086 = vmatmul.mubr.f32.gmra.mrb[122].mxu0 %v257_v1  ;;  %705 = vmatprep.mubr.f32.mxu1 %v260_v2 }
 0x139   :  { %1090 = vmatprep.mubr.f32.mxu0 %v262_v4 }
 0x13a   :  { %1109 = vst [vmem:[%s2532_s2 + $0x40] sm:$0xff] %v823_v7  ;;  %v442_v12 = vpop.f32.mrb[18].mxu1 }
 0x13b   :  { %v827_v14 = vpop.f32.mrb[18].mxu0  ;;  %v444_v15 = vpop.f32.mrb[19].mxu1  ;;  %706 = vmatmul.mubr.f32.gmra.mrb[124].mxu1 %v259_v9 }
 0x13c   :  { %v828_v16 = vadd.f32 %v827_v14, %v442_v12  ;;  %v829_v17 = vpop.f32.mrb[19].mxu0  ;;  %1091 = vmatmul.mubr.f32.gmra.mrb[124].mxu0 %v261_v10  ;;  %710 = vmatprep.mubr.f32.mxu1 %v264_v11 }
 0x13d   :  { %1095 = vmatprep.mubr.f32.mxu0 %v266_v13 }
 0x13e   :  { %1110 = vst [vmem:[%s2532_s2 + $0x48] sm:$0xff] %v828_v16  ;;  %v447_v20 = vpop.f32.mrb[20].mxu1 }
 0x13f   :  { %v832_v21 = vpop.f32.mrb[20].mxu0  ;;  %v449_v22 = vpop.f32.mrb[21].mxu1  ;;  %711 = vmatmul.mubr.f32.gmra.mrb[126].mxu1 %v263_v18 }
 0x140   :  { %v833_v23 = vadd.f32 %v832_v21, %v447_v20  ;;  %v834_v24 = vpop.f32.mrb[21].mxu0  ;;  %1096 = vmatmul.mubr.f32.gmra.mrb[126].mxu0 %v265_v19 }
 0x142   :  { %1111 = vst [vmem:[%s2532_s2 + $0x50] sm:$0xff] %v833_v23  ;;  %v452_v25 = vpop.f32.mrb[22].mxu1 }
 0x143   :  { %v837_v26 = vpop.f32.mrb[22].mxu0  ;;  %v454_v27 = vpop.f32.mrb[23].mxu1 }
 0x144   :  { %v838_v28 = vadd.f32 %v837_v26, %v452_v25  ;;  %v839_v29 = vpop.f32.mrb[23].mxu0 }
 0x146   :  { %1112 = vst [vmem:[%s2532_s2 + $0x58] sm:$0xff] %v838_v28  ;;  %v457_v30 = vpop.f32.mrb[24].mxu1 }
 0x147   :  { %v842_v31 = vpop.f32.mrb[24].mxu0  ;;  %v459_v32 = vpop.f32.mrb[25].mxu1 }
 0x148   :  { %v843_v33 = vadd.f32 %v842_v31, %v457_v30  ;;  %v844_v34 = vpop.f32.mrb[25].mxu0 }
 0x14a   :  { %1113 = vst [vmem:[%s2532_s2 + $0x60] sm:$0xff] %v843_v33  ;;  %v462_v35 = vpop.f32.mrb[26].mxu1 }
 0x14b   :  { %v847_v36 = vpop.f32.mrb[26].mxu0  ;;  %v464_v37 = vpop.f32.mrb[27].mxu1 }
 0x14c   :  { %v848_v38 = vadd.f32 %v847_v36, %v462_v35  ;;  %v849_v39 = vpop.f32.mrb[27].mxu0 }
 0x14e   :  { %1114 = vst [vmem:[%s2532_s2 + $0x68] sm:$0xff] %v848_v38  ;;  %v467_v0 = vpop.f32.mrb[28].mxu1 }
 0x14f   :  { %v852_v40 = vpop.f32.mrb[28].mxu0  ;;  %v469_v41 = vpop.f32.mrb[29].mxu1 }
 0x150   :  { %v853_v42 = vadd.f32 %v852_v40, %v467_v0  ;;  %v854_v43 = vpop.f32.mrb[29].mxu0 }
 0x152   :  { %1115 = vst [vmem:[%s2532_s2 + $0x70] sm:$0xff] %v853_v42  ;;  %v472_v44 = vpop.f32.mrb[30].mxu1 }
 0x153   :  { %v857_v45 = vpop.f32.mrb[30].mxu0  ;;  %v474_v46 = vpop.f32.mrb[31].mxu1 }
 0x154   :  { %v858_v47 = vadd.f32 %v857_v45, %v472_v44  ;;  %v859_v48 = vpop.f32.mrb[31].mxu0 }
 0x156   :  { %1116 = vst [vmem:[%s2532_s2 + $0x78] sm:$0xff] %v858_v47  ;;  %v477_v49 = vpop.f32.mrb[32].mxu1 }
 0x157   :  { %v862_v50 = vpop.f32.mrb[32].mxu0  ;;  %v479_v51 = vpop.f32.mrb[33].mxu1 }
 0x158   :  { %v863_v52 = vadd.f32 %v862_v50, %v477_v49  ;;  %v864_v53 = vpop.f32.mrb[33].mxu0 }
 0x15a   :  { %1117 = vst [vmem:[%s2532_s2 + $0x80] sm:$0xff] %v863_v52  ;;  %v482_v54 = vpop.f32.mrb[34].mxu1 }
 0x15b   :  { %v867_v55 = vpop.f32.mrb[34].mxu0  ;;  %v484_v56 = vpop.f32.mrb[35].mxu1 }
 0x15c   :  { %v868_v57 = vadd.f32 %v867_v55, %v482_v54  ;;  %v869_v58 = vpop.f32.mrb[35].mxu0 }
 0x15e   :  { %1118 = vst [vmem:[%s2532_s2 + $0x88] sm:$0xff] %v868_v57  ;;  %v487_v59 = vpop.f32.mrb[36].mxu1 }
 0x15f   :  { %v872_v60 = vpop.f32.mrb[36].mxu0  ;;  %v489_v61 = vpop.f32.mrb[37].mxu1 }
 0x160   :  { %v873_v62 = vadd.f32 %v872_v60, %v487_v59  ;;  %v874_v63 = vpop.f32.mrb[37].mxu0 }
 0x162   :  { %1119 = vst [vmem:[%s2532_s2 + $0x90] sm:$0xff] %v873_v62  ;;  %v492_v1 = vpop.f32.mrb[38].mxu1 }
 0x163   :  { %v877_v2 = vpop.f32.mrb[38].mxu0  ;;  %v494_v3 = vpop.f32.mrb[39].mxu1 }
 0x164   :  { %v878_v4 = vadd.f32 %v877_v2, %v492_v1  ;;  %v879_v5 = vpop.f32.mrb[39].mxu0 }
 0x166   :  { %1120 = vst [vmem:[%s2532_s2 + $0x98] sm:$0xff] %v878_v4  ;;  %v497_v6 = vpop.f32.mrb[40].mxu1 }
 0x167   :  { %v882_v7 = vpop.f32.mrb[40].mxu0  ;;  %v499_v8 = vpop.f32.mrb[41].mxu1 }
 0x168   :  { %v883_v9 = vadd.f32 %v882_v7, %v497_v6  ;;  %v884_v10 = vpop.f32.mrb[41].mxu0 }
 0x16a   :  { %1121 = vst [vmem:[%s2532_s2 + $0xa0] sm:$0xff] %v883_v9  ;;  %v502_v11 = vpop.f32.mrb[42].mxu1 }
 0x16b   :  { %v887_v12 = vpop.f32.mrb[42].mxu0  ;;  %v504_v13 = vpop.f32.mrb[43].mxu1 }
 0x16c   :  { %v888_v14 = vadd.f32 %v887_v12, %v502_v11  ;;  %v889_v15 = vpop.f32.mrb[43].mxu0 }
 0x16e   :  { %1122 = vst [vmem:[%s2532_s2 + $0xa8] sm:$0xff] %v888_v14  ;;  %v507_v16 = vpop.f32.mrb[44].mxu1 }
 0x16f   :  { %v892_v17 = vpop.f32.mrb[44].mxu0  ;;  %v509_v18 = vpop.f32.mrb[45].mxu1 }
 0x170   :  { %v893_v19 = vadd.f32 %v892_v17, %v507_v16  ;;  %v894_v20 = vpop.f32.mrb[45].mxu0 }
 0x172   :  { %1123 = vst [vmem:[%s2532_s2 + $0xb0] sm:$0xff] %v893_v19  ;;  %v512_v21 = vpop.f32.mrb[46].mxu1 }
 0x173   :  { %v897_v22 = vpop.f32.mrb[46].mxu0  ;;  %v514_v23 = vpop.f32.mrb[47].mxu1 }
 0x174   :  { %v898_v24 = vadd.f32 %v897_v22, %v512_v21  ;;  %v899_v25 = vpop.f32.mrb[47].mxu0 }
 0x176   :  { %1124 = vst [vmem:[%s2532_s2 + $0xb8] sm:$0xff] %v898_v24  ;;  %v517_v26 = vpop.f32.mrb[48].mxu1 }
 0x177   :  { %v902_v27 = vpop.f32.mrb[48].mxu0  ;;  %v519_v28 = vpop.f32.mrb[49].mxu1 }
 0x178   :  { %v903_v29 = vadd.f32 %v902_v27, %v517_v26  ;;  %v904_v30 = vpop.f32.mrb[49].mxu0 }
 0x17a   :  { %1125 = vst [vmem:[%s2532_s2 + $0xc0] sm:$0xff] %v903_v29  ;;  %v522_v31 = vpop.f32.mrb[50].mxu1 }
 0x17b   :  { %v907_v32 = vpop.f32.mrb[50].mxu0  ;;  %v524_v33 = vpop.f32.mrb[51].mxu1 }
 0x17c   :  { %v908_v34 = vadd.f32 %v907_v32, %v522_v31  ;;  %v909_v35 = vpop.f32.mrb[51].mxu0 }
 0x17e   :  { %1126 = vst [vmem:[%s2532_s2 + $0xc8] sm:$0xff] %v908_v34  ;;  %v527_v36 = vpop.f32.mrb[52].mxu1 }
 0x17f   :  { %v912_v37 = vpop.f32.mrb[52].mxu0  ;;  %v529_v38 = vpop.f32.mrb[53].mxu1 }
 0x180   :  { %v913_v39 = vadd.f32 %v912_v37, %v527_v36  ;;  %v914_v0 = vpop.f32.mrb[53].mxu0 }
 0x182   :  { %1127 = vst [vmem:[%s2532_s2 + $0xd0] sm:$0xff] %v913_v39  ;;  %v532_v40 = vpop.f32.mrb[54].mxu1 }
 0x183   :  { %v917_v41 = vpop.f32.mrb[54].mxu0  ;;  %v534_v42 = vpop.f32.mrb[55].mxu1 }
 0x184   :  { %v918_v43 = vadd.f32 %v917_v41, %v532_v40  ;;  %v919_v44 = vpop.f32.mrb[55].mxu0 }
 0x186   :  { %1128 = vst [vmem:[%s2532_s2 + $0xd8] sm:$0xff] %v918_v43  ;;  %v537_v45 = vpop.f32.mrb[56].mxu1 }
 0x187   :  { %v922_v46 = vpop.f32.mrb[56].mxu0  ;;  %v539_v47 = vpop.f32.mrb[57].mxu1 }
 0x188   :  { %v923_v48 = vadd.f32 %v922_v46, %v537_v45  ;;  %v924_v49 = vpop.f32.mrb[57].mxu0 }
 0x18a   :  { %1129 = vst [vmem:[%s2532_s2 + $0xe0] sm:$0xff] %v923_v48  ;;  %v542_v50 = vpop.f32.mrb[58].mxu1 }
 0x18b   :  { %v927_v51 = vpop.f32.mrb[58].mxu0  ;;  %v544_v52 = vpop.f32.mrb[59].mxu1 }
 0x18c   :  { %v928_v53 = vadd.f32 %v927_v51, %v542_v50  ;;  %v929_v54 = vpop.f32.mrb[59].mxu0 }
 0x18e   :  { %1130 = vst [vmem:[%s2532_s2 + $0xe8] sm:$0xff] %v928_v53  ;;  %v547_v55 = vpop.f32.mrb[60].mxu1 }
 0x18f   :  { %v932_v56 = vpop.f32.mrb[60].mxu0  ;;  %v549_v57 = vpop.f32.mrb[61].mxu1 }
 0x190   :  { %v933_v58 = vadd.f32 %v932_v56, %v547_v55  ;;  %v934_v59 = vpop.f32.mrb[61].mxu0 }
 0x192   :  { %1131 = vst [vmem:[%s2532_s2 + $0xf0] sm:$0xff] %v933_v58  ;;  %v552_v60 = vpop.f32.mrb[62].mxu1 }
 0x193   :  { %v937_v61 = vpop.f32.mrb[62].mxu0  ;;  %v554_v62 = vpop.f32.mrb[63].mxu1 }
 0x194   :  { %v938_v63 = vadd.f32 %v937_v61, %v552_v60  ;;  %v939_v1 = vpop.f32.mrb[63].mxu0 }
 0x196   :  { %1132 = vst [vmem:[%s2532_s2 + $0xf8] sm:$0xff] %v938_v63  ;;  %v557_v2 = vpop.f32.mrb[64].mxu1 }
 0x197   :  { %v942_v3 = vpop.f32.mrb[64].mxu0  ;;  %v559_v4 = vpop.f32.mrb[65].mxu1 }
 0x198   :  { %v943_v5 = vadd.f32 %v942_v3, %v557_v2  ;;  %v944_v6 = vpop.f32.mrb[65].mxu0 }
 0x19a   :  { %1133 = vst [vmem:[%s2532_s2 + $0x100] sm:$0xff] %v943_v5  ;;  %v562_v7 = vpop.f32.mrb[66].mxu1 }
 0x19b   :  { %v947_v8 = vpop.f32.mrb[66].mxu0  ;;  %v564_v9 = vpop.f32.mrb[67].mxu1 }
 0x19c   :  { %v948_v10 = vadd.f32 %v947_v8, %v562_v7  ;;  %v949_v11 = vpop.f32.mrb[67].mxu0 }
 0x19e   :  { %1134 = vst [vmem:[%s2532_s2 + $0x108] sm:$0xff] %v948_v10  ;;  %v567_v12 = vpop.f32.mrb[68].mxu1 }
 0x19f   :  { %v952_v13 = vpop.f32.mrb[68].mxu0  ;;  %v569_v14 = vpop.f32.mrb[69].mxu1 }
 0x1a0   :  { %v953_v15 = vadd.f32 %v952_v13, %v567_v12  ;;  %v954_v16 = vpop.f32.mrb[69].mxu0 }
 0x1a2   :  { %1135 = vst [vmem:[%s2532_s2 + $0x110] sm:$0xff] %v953_v15  ;;  %v572_v17 = vpop.f32.mrb[70].mxu1 }
 0x1a3   :  { %v957_v18 = vpop.f32.mrb[70].mxu0  ;;  %v574_v19 = vpop.f32.mrb[71].mxu1 }
 0x1a4   :  { %v958_v20 = vadd.f32 %v957_v18, %v572_v17  ;;  %v959_v21 = vpop.f32.mrb[71].mxu0 }
 0x1a6   :  { %1136 = vst [vmem:[%s2532_s2 + $0x118] sm:$0xff] %v958_v20  ;;  %v577_v22 = vpop.f32.mrb[72].mxu1 }
 0x1a7   :  { %v962_v23 = vpop.f32.mrb[72].mxu0  ;;  %v579_v24 = vpop.f32.mrb[73].mxu1 }
 0x1a8   :  { %v963_v25 = vadd.f32 %v962_v23, %v577_v22  ;;  %v964_v26 = vpop.f32.mrb[73].mxu0 }
 0x1aa   :  { %1137 = vst [vmem:[%s2532_s2 + $0x120] sm:$0xff] %v963_v25  ;;  %v582_v27 = vpop.f32.mrb[74].mxu1 }
 0x1ab   :  { %v967_v28 = vpop.f32.mrb[74].mxu0  ;;  %v584_v29 = vpop.f32.mrb[75].mxu1 }
 0x1ac   :  { %v968_v30 = vadd.f32 %v967_v28, %v582_v27  ;;  %v969_v31 = vpop.f32.mrb[75].mxu0 }
 0x1ae   :  { %1138 = vst [vmem:[%s2532_s2 + $0x128] sm:$0xff] %v968_v30  ;;  %v587_v32 = vpop.f32.mrb[76].mxu1 }
 0x1af   :  { %v972_v33 = vpop.f32.mrb[76].mxu0  ;;  %v589_v34 = vpop.f32.mrb[77].mxu1 }
 0x1b0   :  { %v973_v35 = vadd.f32 %v972_v33, %v587_v32  ;;  %v974_v36 = vpop.f32.mrb[77].mxu0 }
 0x1b2   :  { %1139 = vst [vmem:[%s2532_s2 + $0x130] sm:$0xff] %v973_v35  ;;  %v592_v37 = vpop.f32.mrb[78].mxu1 }
 0x1b3   :  { %v977_v38 = vpop.f32.mrb[78].mxu0  ;;  %v594_v39 = vpop.f32.mrb[79].mxu1 }
 0x1b4   :  { %v978_v0 = vadd.f32 %v977_v38, %v592_v37  ;;  %v979_v40 = vpop.f32.mrb[79].mxu0 }
 0x1b6   :  { %1140 = vst [vmem:[%s2532_s2 + $0x138] sm:$0xff] %v978_v0  ;;  %v597_v41 = vpop.f32.mrb[80].mxu1 }
 0x1b7   :  { %v982_v42 = vpop.f32.mrb[80].mxu0  ;;  %v599_v43 = vpop.f32.mrb[81].mxu1 }
 0x1b8   :  { %v983_v44 = vadd.f32 %v982_v42, %v597_v41  ;;  %v984_v45 = vpop.f32.mrb[81].mxu0 }
 0x1ba   :  { %1141 = vst [vmem:[%s2532_s2 + $0x140] sm:$0xff] %v983_v44  ;;  %v602_v46 = vpop.f32.mrb[82].mxu1 }
 0x1bb   :  { %v987_v47 = vpop.f32.mrb[82].mxu0  ;;  %v604_v48 = vpop.f32.mrb[83].mxu1 }
 0x1bc   :  { %v988_v49 = vadd.f32 %v987_v47, %v602_v46  ;;  %v989_v50 = vpop.f32.mrb[83].mxu0 }
 0x1be   :  { %1142 = vst [vmem:[%s2532_s2 + $0x148] sm:$0xff] %v988_v49  ;;  %v607_v51 = vpop.f32.mrb[84].mxu1 }
 0x1bf   :  { %v992_v52 = vpop.f32.mrb[84].mxu0  ;;  %v609_v53 = vpop.f32.mrb[85].mxu1 }
 0x1c0   :  { %v993_v54 = vadd.f32 %v992_v52, %v607_v51  ;;  %v994_v55 = vpop.f32.mrb[85].mxu0 }
 0x1c2   :  { %1143 = vst [vmem:[%s2532_s2 + $0x150] sm:$0xff] %v993_v54  ;;  %v612_v56 = vpop.f32.mrb[86].mxu1 }
 0x1c3   :  { %v997_v57 = vpop.f32.mrb[86].mxu0  ;;  %v614_v58 = vpop.f32.mrb[87].mxu1 }
 0x1c4   :  { %v998_v59 = vadd.f32 %v997_v57, %v612_v56  ;;  %v999_v60 = vpop.f32.mrb[87].mxu0 }
 0x1c6   :  { %1144 = vst [vmem:[%s2532_s2 + $0x158] sm:$0xff] %v998_v59  ;;  %v617_v61 = vpop.f32.mrb[88].mxu1 }
 0x1c7   :  { %v1002_v62 = vpop.f32.mrb[88].mxu0  ;;  %v619_v63 = vpop.f32.mrb[89].mxu1 }
 0x1c8   :  { %v1003_v1 = vadd.f32 %v1002_v62, %v617_v61  ;;  %v1004_v2 = vpop.f32.mrb[89].mxu0 }
 0x1ca   :  { %1145 = vst [vmem:[%s2532_s2 + $0x160] sm:$0xff] %v1003_v1  ;;  %v622_v3 = vpop.f32.mrb[90].mxu1 }
 0x1cb   :  { %v1007_v4 = vpop.f32.mrb[90].mxu0  ;;  %v624_v5 = vpop.f32.mrb[91].mxu1 }
 0x1cc   :  { %v1008_v6 = vadd.f32 %v1007_v4, %v622_v3  ;;  %v1009_v7 = vpop.f32.mrb[91].mxu0 }
 0x1ce   :  { %1146 = vst [vmem:[%s2532_s2 + $0x168] sm:$0xff] %v1008_v6  ;;  %v627_v8 = vpop.f32.mrb[92].mxu1 }
 0x1cf   :  { %v1012_v9 = vpop.f32.mrb[92].mxu0  ;;  %v629_v10 = vpop.f32.mrb[93].mxu1 }
 0x1d0   :  { %v1013_v11 = vadd.f32 %v1012_v9, %v627_v8  ;;  %v1014_v12 = vpop.f32.mrb[93].mxu0 }
 0x1d2   :  { %1147 = vst [vmem:[%s2532_s2 + $0x170] sm:$0xff] %v1013_v11  ;;  %v632_v13 = vpop.f32.mrb[94].mxu1 }
 0x1d3   :  { %v1017_v14 = vpop.f32.mrb[94].mxu0  ;;  %v634_v15 = vpop.f32.mrb[95].mxu1 }
 0x1d4   :  { %v1018_v16 = vadd.f32 %v1017_v14, %v632_v13  ;;  %v1019_v17 = vpop.f32.mrb[95].mxu0 }
 0x1d6   :  { %1148 = vst [vmem:[%s2532_s2 + $0x178] sm:$0xff] %v1018_v16  ;;  %v637_v18 = vpop.f32.mrb[96].mxu1 }
 0x1d7   :  { %v1022_v19 = vpop.f32.mrb[96].mxu0  ;;  %v639_v20 = vpop.f32.mrb[97].mxu1 }
 0x1d8   :  { %v1023_v21 = vadd.f32 %v1022_v19, %v637_v18  ;;  %v1024_v22 = vpop.f32.mrb[97].mxu0 }
 0x1da   :  { %1149 = vst [vmem:[%s2532_s2 + $0x180] sm:$0xff] %v1023_v21  ;;  %v642_v23 = vpop.f32.mrb[98].mxu1 }
 0x1db   :  { %v1027_v24 = vpop.f32.mrb[98].mxu0  ;;  %v644_v25 = vpop.f32.mrb[99].mxu1 }
 0x1dc   :  { %v1028_v26 = vadd.f32 %v1027_v24, %v642_v23  ;;  %v1029_v27 = vpop.f32.mrb[99].mxu0 }
 0x1de   :  { %1150 = vst [vmem:[%s2532_s2 + $0x188] sm:$0xff] %v1028_v26  ;;  %v647_v28 = vpop.f32.mrb[100].mxu1 }
 0x1df   :  { %v1032_v29 = vpop.f32.mrb[100].mxu0  ;;  %v649_v30 = vpop.f32.mrb[101].mxu1 }
 0x1e0   :  { %v1033_v31 = vadd.f32 %v1032_v29, %v647_v28  ;;  %v1034_v32 = vpop.f32.mrb[101].mxu0 }
 0x1e2   :  { %1151 = vst [vmem:[%s2532_s2 + $0x190] sm:$0xff] %v1033_v31  ;;  %v652_v33 = vpop.f32.mrb[102].mxu1 }
 0x1e3   :  { %v1037_v34 = vpop.f32.mrb[102].mxu0  ;;  %v654_v35 = vpop.f32.mrb[103].mxu1 }
 0x1e4   :  { %v1038_v36 = vadd.f32 %v1037_v34, %v652_v33  ;;  %v1039_v37 = vpop.f32.mrb[103].mxu0 }
 0x1e6   :  { %1152 = vst [vmem:[%s2532_s2 + $0x198] sm:$0xff] %v1038_v36  ;;  %v657_v38 = vpop.f32.mrb[104].mxu1 }
 0x1e7   :  { %v1042_v39 = vpop.f32.mrb[104].mxu0  ;;  %v659_v0 = vpop.f32.mrb[105].mxu1 }
 0x1e8   :  { %v1043_v40 = vadd.f32 %v1042_v39, %v657_v38  ;;  %v1044_v41 = vpop.f32.mrb[105].mxu0 }
 0x1ea   :  { %1153 = vst [vmem:[%s2532_s2 + $0x1a0] sm:$0xff] %v1043_v40  ;;  %v662_v42 = vpop.f32.mrb[106].mxu1 }
 0x1eb   :  { %v1047_v43 = vpop.f32.mrb[106].mxu0  ;;  %v664_v44 = vpop.f32.mrb[107].mxu1 }
 0x1ec   :  { %v1048_v45 = vadd.f32 %v1047_v43, %v662_v42  ;;  %v1049_v46 = vpop.f32.mrb[107].mxu0 }
 0x1ee   :  { %1154 = vst [vmem:[%s2532_s2 + $0x1a8] sm:$0xff] %v1048_v45  ;;  %v667_v47 = vpop.f32.mrb[108].mxu1 }
 0x1ef   :  { %v1052_v48 = vpop.f32.mrb[108].mxu0  ;;  %v669_v49 = vpop.f32.mrb[109].mxu1 }
 0x1f0   :  { %v1053_v50 = vadd.f32 %v1052_v48, %v667_v47  ;;  %v1054_v51 = vpop.f32.mrb[109].mxu0 }
 0x1f2   :  { %1155 = vst [vmem:[%s2532_s2 + $0x1b0] sm:$0xff] %v1053_v50  ;;  %v672_v52 = vpop.f32.mrb[110].mxu1 }
 0x1f3   :  { %v1057_v53 = vpop.f32.mrb[110].mxu0  ;;  %v674_v54 = vpop.f32.mrb[111].mxu1 }
 0x1f4   :  { %v1058_v55 = vadd.f32 %v1057_v53, %v672_v52  ;;  %v1059_v56 = vpop.f32.mrb[111].mxu0 }
 0x1f6   :  { %1156 = vst [vmem:[%s2532_s2 + $0x1b8] sm:$0xff] %v1058_v55  ;;  %v677_v57 = vpop.f32.mrb[112].mxu1 }
 0x1f7   :  { %v1062_v58 = vpop.f32.mrb[112].mxu0  ;;  %v679_v59 = vpop.f32.mrb[113].mxu1 }
 0x1f8   :  { %v1063_v60 = vadd.f32 %v1062_v58, %v677_v57  ;;  %v1064_v61 = vpop.f32.mrb[113].mxu0 }
 0x1fa   :  { %1157 = vst [vmem:[%s2532_s2 + $0x1c0] sm:$0xff] %v1063_v60  ;;  %v682_v62 = vpop.f32.mrb[114].mxu1 }
 0x1fb   :  { %v1067_v63 = vpop.f32.mrb[114].mxu0  ;;  %v684_v1 = vpop.f32.mrb[115].mxu1 }
 0x1fc   :  { %v1068_v2 = vadd.f32 %v1067_v63, %v682_v62  ;;  %v1069_v3 = vpop.f32.mrb[115].mxu0 }
 0x1fe   :  { %1158 = vst [vmem:[%s2532_s2 + $0x1c8] sm:$0xff] %v1068_v2  ;;  %v687_v4 = vpop.f32.mrb[116].mxu1 }
 0x1ff   :  { %v1072_v5 = vpop.f32.mrb[116].mxu0  ;;  %v689_v6 = vpop.f32.mrb[117].mxu1 }
 0x200   :  { %v1073_v7 = vadd.f32 %v1072_v5, %v687_v4  ;;  %v1074_v8 = vpop.f32.mrb[117].mxu0 }
 0x202   :  { %1159 = vst [vmem:[%s2532_s2 + $0x1d0] sm:$0xff] %v1073_v7  ;;  %v692_v9 = vpop.f32.mrb[118].mxu1 }
 0x203   :  { %v1077_v10 = vpop.f32.mrb[118].mxu0  ;;  %v694_v11 = vpop.f32.mrb[119].mxu1 }
 0x204   :  { %v1078_v12 = vadd.f32 %v1077_v10, %v692_v9  ;;  %v1079_v13 = vpop.f32.mrb[119].mxu0 }
 0x206   :  { %1160 = vst [vmem:[%s2532_s2 + $0x1d8] sm:$0xff] %v1078_v12  ;;  %v697_v14 = vpop.f32.mrb[120].mxu1 }
 0x207   :  { %v1082_v15 = vpop.f32.mrb[120].mxu0  ;;  %v699_v16 = vpop.f32.mrb[121].mxu1 }
 0x208   :  { %v1083_v17 = vadd.f32 %v1082_v15, %v697_v14  ;;  %v1084_v18 = vpop.f32.mrb[121].mxu0 }
 0x20a   :  { %1161 = vst [vmem:[%s2532_s2 + $0x1e0] sm:$0xff] %v1083_v17  ;;  %v702_v19 = vpop.f32.mrb[122].mxu1 }
 0x20b   :  { %v1087_v20 = vpop.f32.mrb[122].mxu0  ;;  %v704_v21 = vpop.f32.mrb[123].mxu1 }
 0x20c   :  { %v1088_v22 = vadd.f32 %v1087_v20, %v702_v19  ;;  %v1089_v23 = vpop.f32.mrb[123].mxu0 }
 0x20e   :  { %1162 = vst [vmem:[%s2532_s2 + $0x1e8] sm:$0xff] %v1088_v22  ;;  %v707_v24 = vpop.f32.mrb[124].mxu1 }
 0x20f   :  { %v1092_v25 = vpop.f32.mrb[124].mxu0  ;;  %v709_v26 = vpop.f32.mrb[125].mxu1 }
 0x210   :  { %v1093_v27 = vadd.f32 %v1092_v25, %v707_v24  ;;  %v1094_v28 = vpop.f32.mrb[125].mxu0 }
 0x212   :  { %1163 = vst [vmem:[%s2532_s2 + $0x1f0] sm:$0xff] %v1093_v27  ;;  %v712_v29 = vpop.f32.mrb[126].mxu1 }
 0x213   :  { %v1097_v30 = vpop.f32.mrb[126].mxu0  ;;  %v714_v31 = vpop.f32.mrb[127].mxu1 }
 0x214   :  { %v1098_v32 = vadd.f32 %v1097_v30, %v712_v29  ;;  %v1099_v33 = vpop.f32.mrb[127].mxu0 }
 0x216   :  { %1164 = vst [vmem:[%s2532_s2 + $0x1f8] sm:$0xff] %v1098_v32 }

</bundles_post_ra>
